<compile_context>
chip_gen: v5e
topology: v5e:2x2
jax: 0.10.0
libtpu: 0.0.40
codegen_flags: <defaults>
</compile_context>

<pallas_src>
import functools

import numpy as np
import jax
import jax.numpy as jnp
from jax import lax
from jax.experimental import pallas as pl
from jax.experimental.pallas import tpu as pltpu

# ----------------------------- dimensions -----------------------------------
D_NODE = 16                      # 'basic' node encoder feature size
D_EDGE = 19                      # edge feature size
D_IN   = 2 * D_NODE + D_EDGE     # 51 (logical MLP input width)
HIDDEN = 32
OUT    = 2
TILE_E = 2048                    # edges per grid step (lane axis, /128 ok)


def _next_pow2(n: int) -> int:
    return 1 if n <= 1 else 1 << (int(n) - 1).bit_length()


# ----------------------------- Pallas kernel --------------------------------
def _edge_mlp_kernel(idx_ref, eT_ref, xaT_ref, xbT_ref, w1eT_ref,
                     b1_ref, w2T_ref, b2_ref, out_ref):
    # Feature-major layout: features on sublanes, edges on lanes.
    #   idx_ref  : (2, TILE_E)        int32  src/dst cluster index per edge
    #   eT_ref   : (D_EDGE, TILE_E)   f32    streamed edge features (transposed)
    #   xaT_ref  : (HIDDEN, C_pad)    f32    (x @ w1[:16]).T   node table (resident)
    #   xbT_ref  : (HIDDEN, C_pad)    f32    (x @ w1[16:32]).T node table (resident)
    #   w1eT_ref : (HIDDEN, D_EDGE)   f32    w1[32:].T
    #   b1_ref   : (HIDDEN, 1)        f32
    #   w2T_ref  : (OUT, HIDDEN)      f32
    #   b2_ref   : (OUT, 1)           f32
    #   out_ref  : (OUT, TILE_E)      f32    channel-major logits (lane-dense)
    c_pad = xaT_ref.shape[1]
    tile = out_ref.shape[1]

    idx = idx_ref[...]                                            # (2, TILE)
    node_iota = lax.broadcasted_iota(jnp.int32, (c_pad, tile), 0)
    # Gather-by-one-hot-matmul: exact, always lowers, keeps x-path in f32.
    src_oh = (node_iota == idx[0:1, :]).astype(jnp.float32)       # (C_pad, TILE)
    dst_oh = (node_iota == idx[1:2, :]).astype(jnp.float32)

    h = jnp.dot(xaT_ref[...], src_oh, preferred_element_type=jnp.float32)
    h = h + jnp.dot(xbT_ref[...], dst_oh, preferred_element_type=jnp.float32)
    h = h + jnp.dot(w1eT_ref[...], eT_ref[...],
                    preferred_element_type=jnp.float32)
    h = jnp.maximum(h + b1_ref[...], 0.0)                         # (HIDDEN, TILE)

    out_ref[...] = (jnp.dot(w2T_ref[...], h,
                            preferred_element_type=jnp.float32)
                    + b2_ref[...])                                # (OUT, TILE)


@functools.partial(jax.jit, static_argnames=("c_pad",))
def _edge_mlp_padded(x, idxT, eT, w1, b1, w2, b2, *, c_pad):
    """x: (C,16) f32, idxT: (2,E_pad) i32, eT: (19,E_pad) f32 -> (2,E_pad) f32."""
    C = x.shape[0]
    E_pad = eT.shape[1]

    # Tiny per-forward node tables: fold the node half of w1 into x once.
    xf = x.astype(jnp.float32)
    xa = jnp.dot(xf, w1[:D_NODE, :])                 # (C, HIDDEN)
    xb = jnp.dot(xf, w1[D_NODE:2 * D_NODE, :])       # (C, HIDDEN)
    xaT = jnp.pad(xa.T, ((0, 0), (0, c_pad - C)))    # (HIDDEN, C_pad)
    xbT = jnp.pad(xb.T, ((0, 0), (0, c_pad - C)))
    w1eT = w1[2 * D_NODE:, :].T.astype(jnp.float32)   # (HIDDEN, D_EDGE)
    w2T = w2.T                                        # (OUT, HIDDEN)
    b1c = b1.reshape(HIDDEN, 1)
    b2c = b2.reshape(OUT, 1)

    return pl.pallas_call(
        _edge_mlp_kernel,
        out_shape=jax.ShapeDtypeStruct((OUT, E_pad), jnp.float32),
        grid_spec=pltpu.PrefetchScalarGridSpec(
            num_scalar_prefetch=0,
            grid=(E_pad // TILE_E,),
            in_specs=[
                pl.BlockSpec((2, TILE_E), lambda i: (0, i)),        # idxT
                pl.BlockSpec((D_EDGE, TILE_E), lambda i: (0, i)),   # eT (stream)
                pl.BlockSpec((HIDDEN, c_pad), lambda i: (0, 0)),    # xaT (resident)
                pl.BlockSpec((HIDDEN, c_pad), lambda i: (0, 0)),    # xbT (resident)
                pl.BlockSpec((HIDDEN, D_EDGE), lambda i: (0, 0)),   # w1eT
                pl.BlockSpec((HIDDEN, 1), lambda i: (0, 0)),        # b1
                pl.BlockSpec((OUT, HIDDEN), lambda i: (0, 0)),      # w2T
                pl.BlockSpec((OUT, 1), lambda i: (0, 0)),           # b2
            ],
            out_specs=pl.BlockSpec((OUT, TILE_E), lambda i: (0, i)),
        ),
        compiler_params=pltpu.CompilerParams(
            dimension_semantics=("parallel",)),   # megacore split
    )(idxT, eT, xaT, xbT, w1eT, b1c, w2T, b2c)


# ----------------------------- edge predictor --------------------------------
class PallasEdgePredictor:
    """Synthetic edge model: MLP([x_src, x_dst, e]) -> (E, 2) logits."""

    def __init__(self, key):
        k1, k2, k3, k4 = jax.random.split(key, 4)
        self.w1 = 0.2 * jax.random.normal(k1, (D_IN, HIDDEN), jnp.float32)
        self.b1 = 0.1 * jax.random.normal(k2, (1, HIDDEN), jnp.float32)
        self.w2 = 0.2 * jax.random.normal(k3, (HIDDEN, OUT), jnp.float32)
        self.b2 = 0.1 * jax.random.normal(k4, (1, OUT), jnp.float32)

    def __call__(self, x, index, e, xbatch):
        index_np = np.asarray(index, dtype=np.int64)
        e_np = np.asarray(e, dtype=np.float32)
        E = int(e_np.shape[0])

        # Bucket the edge count (pow2 number of TILE_E tiles) -> few jit entries.
        n_tiles = _next_pow2(-(-E // TILE_E))
        E_pad = n_tiles * TILE_E

        # Host-side padding + transpose (avoids a device zeros+scatter pass).
        idxT = np.zeros((2, E_pad), dtype=np.int32)
        idxT[:, :E] = index_np
        eT = np.zeros((D_EDGE, E_pad), dtype=np.float32)
        eT[:, :E] = e_np.T

        C = int(x.shape[0])
        c_pad = max(8, _next_pow2(C))

        out = _edge_mlp_padded(jnp.asarray(x, jnp.float32),
                               jnp.asarray(idxT), jnp.asarray(eT),
                               self.w1, self.b1, self.w2, self.b2,
                               c_pad=c_pad)
        logits = out[:, :E].T            # (E, 2) f32 two-channel logits
        return {"edge_pred": [logits]}


def _reference_logits(x, edges, e, w1, b1, w2, b2):
    """Pure-jnp reference (all f32, matching the kernel)."""
    xs = x[edges[0]]
    xd = x[edges[1]]
    e_f = jnp.asarray(e, jnp.float32)
    h = xs @ w1[:D_NODE] + xd @ w1[D_NODE:2 * D_NODE] + e_f @ w1[2 * D_NODE:] + b1
    h = jnp.maximum(h, 0.0)
    return h @ w2 + b2


# ----------------------------- host-side helpers -----------------------------
# Simplified re-implementations of the mlreco cluster utilities (glue, numpy).

def form_clusters(cluster_label, min_size=-1):
    clusts = []
    batches = np.unique(cluster_label[:, 3])
    for b in batches:
        binds = np.where(cluster_label[:, 3] == b)[0]
        for c in np.unique(cluster_label[binds, 5]):
            cinds = binds[cluster_label[binds, 5] == c]
            if min_size > 0 and len(cinds) < min_size:
                continue
            clusts.append(cinds)
    return clusts


def get_cluster_batch(cluster_label, clusts):
    return np.array([cluster_label[c[0], 3] for c in clusts], dtype=np.int64)


def get_cluster_label(cluster_label, clusts):
    return np.array([cluster_label[c[0], 5] for c in clusts], dtype=np.int64)


def get_cluster_group(cluster_label, clusts):
    return np.array([cluster_label[c[0], 6] for c in clusts], dtype=np.int64)


def cluster_vtx_features(cluster_label, clusts):
    # 16 features / cluster: centroid(3), covariance(9), npix, mean/std/sum val
    feats = []
    for c in clusts:
        vox = cluster_label[c, :3]
        vals = cluster_label[c, 4]
        center = vox.mean(0)
        centered = vox - center
        cov = centered.T @ centered / max(len(c), 1)
        feats.append(np.concatenate([
            center, cov.reshape(-1),
            [float(len(c))], [vals.mean()], [vals.std()], [vals.sum()]]))
    return np.asarray(feats, dtype=np.float32)


def cluster_edge_features(cluster_label, clusts, edges):
    # 19 features / edge: centroid_i(3), centroid_j(3), disp(3), len(1), outer(9)
    feats = []
    for k in range(edges.shape[1]):
        i, j = int(edges[0, k]), int(edges[1, k])
        ci = cluster_label[clusts[i], :3].mean(0)
        cj = cluster_label[clusts[j], :3].mean(0)
        disp = cj - ci
        length = np.linalg.norm(disp)
        d = disp / (length + 1e-8)
        feats.append(np.concatenate([ci, cj, disp, [length],
                                     np.outer(d, d).reshape(-1)]))
    return np.asarray(feats, dtype=np.float32)


def inter_cluster_distance(voxels, clusts, metric="set"):
    cents = np.array([voxels[c].mean(0) for c in clusts])
    diff = cents[:, None, :] - cents[None, :, :]
    return np.linalg.norm(diff, axis=-1)  # centroid metric (simplified)


def bipartite_graph(batch_ids, assigned, dist_mat=None, max_dist=-1):
    others = np.setdiff1d(np.arange(len(batch_ids)), assigned)
    edges = []
    for i in assigned:
        for j in others:
            if batch_ids[i] != batch_ids[j]:
                continue
            if dist_mat is not None and max_dist > 0 and dist_mat[i, j] > max_dist:
                continue
            edges.append([i, j])
    if not edges:
        return np.empty((2, 0), dtype=np.int64)
    return np.asarray(edges, dtype=np.int64).T


# ----------------------------- the module ------------------------------------
class IterativeEdgeModel:
    """JAX/Pallas port of mlreco IterativeEdgeModel forward semantics."""

    def __init__(self, cfg, key):
        mc = cfg["iter_edge_model"]
        self.node_type = mc.get("node_type", 0)
        self.node_min_size = mc.get("node_min_size", -1)
        self.node_encoder = mc.get("node_encoder", "basic")
        self.edge_max_dist = mc.get("edge_max_dist", -1)
        self.edge_dist_metric = mc.get("edge_dist_metric", "set")
        self.maxiter = mc.get("maxiter", 10)
        self.thresh = mc.get("thresh", 0.9)
        self.edge_predictor = PallasEdgePredictor(key)

    @staticmethod
    def default_return():
        xg = jnp.empty((0, 2), jnp.float32)
        x = np.empty(0)
        e = np.empty((2, 0))
        return {"edge_pred": [xg], "clust_ids": [x], "batch_ids": [x],
                "primary_ids": [x], "edge_index": [e], "matched": [x],
                "counter": [np.array([0])]}

    @staticmethod
    def assign_clusters(edge_index, edge_pred, others, matched, thresh):
        found_match = False
        scores = np.asarray(jax.nn.softmax(edge_pred, axis=1)[:, 1])
        for i in others:
            inds = np.where(edge_index[1, :] == i)[0]
            if not len(inds):
                continue
            indmax = int(np.argmax(scores[inds]))
            ei = inds[indmax]
            if scores[ei] > thresh:
                found_match = True
                j = edge_index[0, ei]
                matched[i] = matched[j]
        return matched, found_match

    def forward(self, data):
        cluster_label = np.asarray(data[0], dtype=np.float64)

        if self.node_type > -1:
            mask = np.where(cluster_label[:, -1] == 0)[0]
            clusts = form_clusters(cluster_label[mask], self.node_min_size)
            clusts = [mask[c] for c in clusts]
        else:
            clusts = form_clusters(cluster_label, self.node_min_size)
        if not len(clusts):
            return self.default_return()

        batch_ids = get_cluster_batch(cluster_label, clusts)
        clust_ids = get_cluster_label(cluster_label, clusts)
        group_ids = get_cluster_group(cluster_label, clusts)
        primary_ids = np.where(clust_ids == group_ids)[0]

        if self.node_encoder == "basic":
            x = jnp.asarray(cluster_vtx_features(cluster_label, clusts))
        else:
            raise NotImplementedError("CNN encoder not implemented")
            # TODO(synk): 'cnn' node encoder (sparse CNN) has no clean Pallas port here.

        dist_mat = None
        if self.edge_max_dist > 0:
            dist_mat = inter_cluster_distance(
                cluster_label[:, :3], clusts, self.edge_dist_metric)

        xbatch = jnp.asarray(batch_ids)
        matched = np.repeat(-1, len(clusts))
        matched[primary_ids] = primary_ids

        counter = 0
        edge_index, edge_pred = [], []
        found_match = True
        while -1 in matched and counter < self.maxiter and found_match:
            counter += 1
            assigned = np.where(matched > -1)[0]
            others = np.where(matched == -1)[0]
            edges = bipartite_graph(batch_ids, assigned, dist_mat,
                                    self.edge_max_dist)
            if edges.shape[1] < 2:
                counter -= 1
                break
            # NOTE: per-edge python feature loop dominates host wall clock for
            # realistic inputs; kept as-is (host-side glue, matches reference).
            e_np = cluster_edge_features(cluster_label, clusts, edges)
            out = self.edge_predictor(x, edges, e_np, xbatch)
            pred = out["edge_pred"][0]
            edge_pred.append(pred)
            edge_index.append(edges)
            matched, found_match = self.assign_clusters(
                edges, pred, others, matched, self.thresh)

        return {"edge_pred": [edge_pred], "matched": [matched],
                "edge_index": [edge_index], "counter": [np.array([counter])],
                "clust_ids": [clust_ids], "batch_ids": [batch_ids],
                "primary_ids": [primary_ids]}


# ----------------------------- example / main --------------------------------
def make_synthetic_data(key):
    """Build (N,8) cluster_label: [x, y, z, batchid, value, id, groupid, shape]."""
    # batch 0: clusters 0..3, groups (0,0,2,2) -> primaries: clusters 0 and 2
    # batch 1: clusters 0..2, groups (0,0,0)   -> primary : cluster 0
    spec = [(0, 0, 0), (0, 1, 0), (0, 2, 2), (0, 3, 2),
            (1, 0, 0), (1, 1, 0), (1, 2, 0)]
    vox_per_clust = 8
    rows = []
    keys = jax.random.split(key, len(spec) + 1)
    for k, (b, cid, gid) in enumerate(spec):
        kp, kv = jax.random.split(keys[k])
        center = jnp.array([10.0 * cid, 5.0 * b, 3.0 * gid])
        pos = center + 1.5 * jax.random.normal(kp, (vox_per_clust, 3))
        val = jax.random.uniform(kv, (vox_per_clust, 1)) + 0.5
        meta = jnp.tile(jnp.array([[b, 0.0, cid, gid, 0.0]]), (vox_per_clust, 1))
        # columns: x y z | batch | value | id | group | shape(=0, EM)
        row = jnp.concatenate(
            [pos, meta[:, 0:1], val, meta[:, 2:3], meta[:, 3:4], meta[:, 4:5]],
            axis=1)
        rows.append(row)
    return jnp.concatenate(rows, axis=0)  # (56, 8)


if __name__ == "__main__":
    key = jax.random.PRNGKey(0)
    k_data, k_model, k_chk = jax.random.split(key, 3)

    cluster_label = make_synthetic_data(k_data)

    cfg = {"iter_edge_model": {"node_type": 0, "node_min_size": -1,
                               "node_encoder": "basic", "edge_max_dist": -1,
                               "maxiter": 10, "thresh": 0.2}}
    model = IterativeEdgeModel(cfg, k_model)

    # --- standalone kernel correctness check vs. pure-jnp reference ----------
    kc1, kc2, kc3 = jax.random.split(k_chk, 3)
    C_chk, E_chk = 7, 37
    x_chk = jax.random.normal(kc1, (C_chk, D_NODE), jnp.float32)
    edges_chk = np.stack([
        np.asarray(jax.random.randint(kc2, (E_chk,), 0, C_chk)),
        np.asarray(jax.random.randint(kc3, (E_chk,), 0, C_chk))]).astype(np.int64)
    e_chk = np.asarray(
        jax.random.uniform(kc1, (E_chk, D_EDGE), jnp.float32, -1.0, 1.0))
    pred_chk = model.edge_predictor(x_chk, edges_chk, e_chk, None)["edge_pred"][0]
    ref_chk = _reference_logits(x_chk, edges_chk, e_chk,
                                model.edge_predictor.w1, model.edge_predictor.b1,
                                model.edge_predictor.w2, model.edge_predictor.b2)
    jax.block_until_ready(pred_chk)
    np.testing.assert_allclose(np.asarray(pred_chk), np.asarray(ref_chk),
                               rtol=1e-4, atol=1e-4)

    # --- full forward pass ----------------------------------------------------
    result = model.forward([cluster_label])

    # Block on all device outputs produced by the Pallas kernel.
    for pred in result["edge_pred"][0]:
        jax.block_until_ready(pred)

    # Basic sanity checks on shapes/semantics.
    for pred, edges in zip(result["edge_pred"][0], result["edge_index"][0]):
        assert pred.shape == (edges.shape[1], 2)
        assert pred.dtype == jnp.float32
    assert result["counter"][0][0] >= 1
    assert len(result["matched"][0]) == len(result["clust_ids"][0])

    print("KERNEL_OK")
</pallas_src>

<mosaic_0001>
module attributes {stable_mosaic.version = 11 : i64} {
  func.func @_edge_mlp_kernel(%arg0: i32, %arg1: memref<2x2048xi32, #tpu.memory_space<vmem>>, %arg2: memref<19x2048xf32, #tpu.memory_space<vmem>>, %arg3: memref<32x8xf32, #tpu.memory_space<vmem>>, %arg4: memref<32x8xf32, #tpu.memory_space<vmem>>, %arg5: memref<32x19xf32, #tpu.memory_space<vmem>>, %arg6: memref<32x1xf32, #tpu.memory_space<vmem>>, %arg7: memref<2x32xf32, #tpu.memory_space<vmem>>, %arg8: memref<2x1xf32, #tpu.memory_space<vmem>>, %arg9: memref<2x2048xf32, #tpu.memory_space<vmem>>) attributes {dimension_semantics = [#tpu.dimension_semantics<parallel>], iteration_bounds = array<i64: 1>, scalar_prefetch = 0 : i64, scratch_operands = 0 : i64, tpu.core_type = #tpu.core_type<tc>, window_params = [{transform_indices = @transform_0, window_bounds = array<i64: 2, 2048>}, {transform_indices = @transform_1, window_bounds = array<i64: 19, 2048>}, {pipeline_mode = #tpu.pipeline_mode<synchronous>, transform_indices = @transform_2, window_bounds = array<i64: 32, 8>}, {pipeline_mode = #tpu.pipeline_mode<synchronous>, transform_indices = @transform_3, window_bounds = array<i64: 32, 8>}, {pipeline_mode = #tpu.pipeline_mode<synchronous>, transform_indices = @transform_4, window_bounds = array<i64: 32, 19>}, {pipeline_mode = #tpu.pipeline_mode<synchronous>, transform_indices = @transform_5, window_bounds = array<i64: 32, 1>}, {pipeline_mode = #tpu.pipeline_mode<synchronous>, transform_indices = @transform_6, window_bounds = array<i64: 2, 32>}, {pipeline_mode = #tpu.pipeline_mode<synchronous>, transform_indices = @transform_7, window_bounds = array<i64: 2, 1>}, {transform_indices = @transform_8, window_bounds = array<i64: 2, 2048>}]} {
    %c0 = arith.constant 0 : index
    %c0_0 = arith.constant 0 : index
    %0 = vector.load %arg1[%c0, %c0_0] : memref<2x2048xi32, #tpu.memory_space<vmem>>, vector<2x2048xi32>
    %1 = tpu.iota {dimensions = array<i32: 0>} : vector<8x2048xi32>
    %2 = vector.extract_strided_slice %0 {offsets = [0, 0], sizes = [1, 2048], strides = [1, 1]} : vector<2x2048xi32> to vector<1x2048xi32>
    %3 = vector.broadcast %2 : vector<1x2048xi32> to vector<8x2048xi32>
    %4 = arith.cmpi eq, %1, %3 : vector<8x2048xi32>
    %5 = arith.extui %4 : vector<8x2048xi1> to vector<8x2048xi32>
    %6 = arith.sitofp %5 : vector<8x2048xi32> to vector<8x2048xf32>
    %7 = vector.extract_strided_slice %0 {offsets = [1, 0], sizes = [1, 2048], strides = [1, 1]} : vector<2x2048xi32> to vector<1x2048xi32>
    %8 = vector.broadcast %7 : vector<1x2048xi32> to vector<8x2048xi32>
    %9 = arith.cmpi eq, %1, %8 : vector<8x2048xi32>
    %10 = arith.extui %9 : vector<8x2048xi1> to vector<8x2048xi32>
    %11 = arith.sitofp %10 : vector<8x2048xi32> to vector<8x2048xf32>
    %c0_1 = arith.constant 0 : index
    %c0_2 = arith.constant 0 : index
    %12 = vector.load %arg3[%c0_1, %c0_2] : memref<32x8xf32, #tpu.memory_space<vmem>>, vector<32x8xf32>
    %cst = arith.constant dense<0.000000e+00> : vector<32x2048xf32>
    %13 = tpu.matmul %12, %6, %cst {dimension_numbers = #tpu.dot_dimension_numbers<[1], [0], [0], [1], [0, 0, 1, 1], [], []>} : vector<32x8xf32>, vector<8x2048xf32>, vector<32x2048xf32> -> vector<32x2048xf32>
    %c0_3 = arith.constant 0 : index
    %c0_4 = arith.constant 0 : index
    %14 = vector.load %arg4[%c0_3, %c0_4] : memref<32x8xf32, #tpu.memory_space<vmem>>, vector<32x8xf32>
    %cst_5 = arith.constant dense<0.000000e+00> : vector<32x2048xf32>
    %15 = tpu.matmul %14, %11, %cst_5 {dimension_numbers = #tpu.dot_dimension_numbers<[1], [0], [0], [1], [0, 0, 1, 1], [], []>} : vector<32x8xf32>, vector<8x2048xf32>, vector<32x2048xf32> -> vector<32x2048xf32>
    %16 = arith.addf %13, %15 : vector<32x2048xf32>
    %c0_6 = arith.constant 0 : index
    %c0_7 = arith.constant 0 : index
    %17 = vector.load %arg5[%c0_6, %c0_7] : memref<32x19xf32, #tpu.memory_space<vmem>>, vector<32x19xf32>
    %c0_8 = arith.constant 0 : index
    %c0_9 = arith.constant 0 : index
    %18 = vector.load %arg2[%c0_8, %c0_9] : memref<19x2048xf32, #tpu.memory_space<vmem>>, vector<19x2048xf32>
    %cst_10 = arith.constant dense<0.000000e+00> : vector<32x2048xf32>
    %19 = tpu.matmul %17, %18, %cst_10 {dimension_numbers = #tpu.dot_dimension_numbers<[1], [0], [0], [1], [0, 0, 1, 1], [], []>} : vector<32x19xf32>, vector<19x2048xf32>, vector<32x2048xf32> -> vector<32x2048xf32>
    %20 = arith.addf %16, %19 : vector<32x2048xf32>
    %c0_11 = arith.constant 0 : index
    %c0_12 = arith.constant 0 : index
    %21 = vector.load %arg6[%c0_11, %c0_12] : memref<32x1xf32, #tpu.memory_space<vmem>>, vector<32x1xf32>
    %22 = vector.broadcast %21 : vector<32x1xf32> to vector<32x2048xf32>
    %23 = arith.addf %20, %22 : vector<32x2048xf32>
    %cst_13 = arith.constant 0.000000e+00 : f32
    %24 = vector.broadcast %cst_13 : f32 to vector<32x2048xf32>
    %25 = arith.maximumf %23, %24 : vector<32x2048xf32>
    %c0_14 = arith.constant 0 : index
    %c0_15 = arith.constant 0 : index
    %26 = vector.load %arg7[%c0_14, %c0_15] : memref<2x32xf32, #tpu.memory_space<vmem>>, vector<2x32xf32>
    %cst_16 = arith.constant dense<0.000000e+00> : vector<2x2048xf32>
    %27 = tpu.matmul %26, %25, %cst_16 {dimension_numbers = #tpu.dot_dimension_numbers<[1], [0], [0], [1], [0, 0, 1, 1], [], []>} : vector<2x32xf32>, vector<32x2048xf32>, vector<2x2048xf32> -> vector<2x2048xf32>
    %c0_17 = arith.constant 0 : index
    %c0_18 = arith.constant 0 : index
    %28 = vector.load %arg8[%c0_17, %c0_18] : memref<2x1xf32, #tpu.memory_space<vmem>>, vector<2x1xf32>
    %29 = vector.broadcast %28 : vector<2x1xf32> to vector<2x2048xf32>
    %30 = arith.addf %27, %29 : vector<2x2048xf32>
    %c0_19 = arith.constant 0 : index
    %c0_20 = arith.constant 0 : index
    %31 = vector.load %arg9[%c0_19, %c0_20] : memref<2x2048xf32, #tpu.memory_space<vmem>>, vector<2x2048xf32>
    tpu.vector_store %arg9[%c0_19, %c0_20], %30 {strides = array<i32>} : memref<2x2048xf32, #tpu.memory_space<vmem>>, vector<2x2048xf32>,
    return
  }
  func.func @transform_0(%arg0: i32) -> (i32, i32) {
    %c0_i32 = arith.constant 0 : i32
    %c0_i32_0 = arith.constant 0 : i32
    return %c0_i32, %arg0 : i32, i32
  }
  func.func @transform_1(%arg0: i32) -> (i32, i32) {
    %c0_i32 = arith.constant 0 : i32
    %c0_i32_0 = arith.constant 0 : i32
    return %c0_i32, %arg0 : i32, i32
  }
  func.func @transform_2(%arg0: i32) -> (i32, i32) {
    %c0_i32 = arith.constant 0 : i32
    %c0_i32_0 = arith.constant 0 : i32
    %c0_i32_1 = arith.constant 0 : i32
    return %c0_i32, %c0_i32_0 : i32, i32
  }
  func.func @transform_3(%arg0: i32) -> (i32, i32) {
    %c0_i32 = arith.constant 0 : i32
    %c0_i32_0 = arith.constant 0 : i32
    %c0_i32_1 = arith.constant 0 : i32
    return %c0_i32, %c0_i32_0 : i32, i32
  }
  func.func @transform_4(%arg0: i32) -> (i32, i32) {
    %c0_i32 = arith.constant 0 : i32
    %c0_i32_0 = arith.constant 0 : i32
    %c0_i32_1 = arith.constant 0 : i32
    return %c0_i32, %c0_i32_0 : i32, i32
  }
  func.func @transform_5(%arg0: i32) -> (i32, i32) {
    %c0_i32 = arith.constant 0 : i32
    %c0_i32_0 = arith.constant 0 : i32
    %c0_i32_1 = arith.constant 0 : i32
    return %c0_i32, %c0_i32_0 : i32, i32
  }
  func.func @transform_6(%arg0: i32) -> (i32, i32) {
    %c0_i32 = arith.constant 0 : i32
    %c0_i32_0 = arith.constant 0 : i32
    %c0_i32_1 = arith.constant 0 : i32
    return %c0_i32, %c0_i32_0 : i32, i32
  }
  func.func @transform_7(%arg0: i32) -> (i32, i32) {
    %c0_i32 = arith.constant 0 : i32
    %c0_i32_0 = arith.constant 0 : i32
    %c0_i32_1 = arith.constant 0 : i32
    return %c0_i32, %c0_i32_0 : i32, i32
  }
  func.func @transform_8(%arg0: i32) -> (i32, i32) {
    %c0_i32 = arith.constant 0 : i32
    %c0_i32_0 = arith.constant 0 : i32
    return %c0_i32, %arg0 : i32, i32
  }
}

</mosaic_0001>

<bundles_post_ra>
// kernel: _edge_mlp_padded.1
= control target key start
LH: loop header
LB: loop body
LE: loop exit
PB: predicated region body
PF: predicated region fallthrough
CT: control target
= control target key end

     0   :  { %13 = vsyncpa [#allocation3], 0  ;;  %s3909_s0 = inlined_call_operand.vmem [shape: s32[2,2048], index: 0, kind: input, shape index: {}]   ;;  %s3910_s1 = inlined_call_operand.hbm [shape: f32[19,2048], index: 1, kind: input, shape index: {}]   ;;  %s3911_s2 = inlined_call_operand.vmem [shape: f32[32,8], index: 2, kind: input, shape index: {}]   ;;  %s3912_s3 = inlined_call_operand.vmem [shape: f32[32,8], index: 3, kind: input, shape index: {}]   ;;  %s3913_s4 = inlined_call_operand.vmem [shape: f32[32,19], index: 4, kind: input, shape index: {}]   ;;  %s3914_s5 = inlined_call_operand.vmem [shape: f32[32,1], index: 5, kind: input, shape index: {}]   ;;  %s3915_s6 = inlined_call_operand.vmem [shape: f32[2,32], index: 6, kind: input, shape index: {}]   ;;  %s3916_s7 = inlined_call_operand.vmem [shape: f32[2,1], index: 7, kind: input, shape index: {}]   ;;  %s3917_s8 = inlined_call_operand.hbm [shape: f32[2,2048], index: 8, kind: output, shape index: {}]  }
   0x1   :  { %14 = vsyncpa [#allocation4], 0  ;;  %s21_s29 = sshll.u32 %s3910_s1, 4  ;;  %s2715_s30 = smov [#allocation2]   ;;  %s22_s29 = int_to_ptr.hbm [resolvable:$true] %s21_s29 }
   0x2   :  { %s23_s9 = sshll.u32 %s2715_s30, 4  ;;  %s2716_s10 = smov 2048   ;;  %s24_s9 = int_to_ptr.vmem [resolvable:$true] %s23_s9 }
   0x3   :  { %s2717_s11 = smov 128  }
   0x4   :  { %29 = dma.hbm_to_vmem [thread:$0]  %s22_s29, 6144, %s24_s9, [#allocation3], %s2716_s10, %s2716_s10, %s2717_s11  }
   0x5   :  { %2711 = dma.done.wait [#allocation3], 6144  }
   0x6   :  { %2712 = vsyncadd [#allocation3], 4294961152  ;;  %v50_v0 = vlaneseq  ;;  %v2772_v1 = vld [vmem:[%s3909_s0] sm:$0xff]  ;;  %vm220_vm0 = vcmask 64512   ;;  %v2779_v3 = vld [vmem:[%s3909_s0 + $0x8] sm:$0xff]  ;;  %v2718_v21 = vmov 1.0  }
   0x7   :  { %v132_v4 = vperm.slane %v2772_v1, 1  ;;  %v133_v5 = vperm.slane %v2772_v1, 3  ;;  %v134_v6 = vperm.slane %v2772_v1, 5  ;;  %v135_v7 = vperm.slane %v2772_v1, 7  ;;  %v2796_v20 = vld [vmem:[%s3912_s3] sm:$0xff]  ;;  %v2817_v22 = vld [vmem:[%s3909_s0 + $0x10] sm:$0xff] }
   0x8   :  { %v2774_v2 = vshrl.u32 %v50_v0, 7  ;;  %v138_v8 = vperm.slane %v2779_v3, 5  ;;  %v139_v9 = vperm.slane %v2779_v3, 7  ;;  %v137_v10 = vperm.slane %v2779_v3, 3  ;;  %v2828_v27 = vld [vmem:[%s3912_s3 + $0x8] sm:$0xff]  ;;  %v2847_v32 = vld [vmem:[%s3912_s3 + $0x10] sm:$0xff] }
   0x9   :  { %v136_v11 = vperm.slane %v2779_v3, 1  ;;  %v148_v12 = vperm.slane %v132_v4, 1  ;;  %v149_v13 = vperm.slane %v133_v5, 1  ;;  %v150_v14 = vperm.slane %v134_v6, 1  ;;  %v2864_v33 = vld [vmem:[%s3912_s3 + $0x18] sm:$0xff]  ;;  %v3018_v61 = vld [vmem:[%s3911_s2] sm:$0xff] }
   0xa   :  { %v151_v15 = vperm.slane %v135_v7, 1  ;;  %v154_v16 = vperm.slane %v138_v8, 1  ;;  %v155_v17 = vperm.slane %v139_v9, 1  ;;  %v153_v18 = vperm.slane %v137_v10, 1  ;;  %v2885_v34 = vld [vmem:[%s3909_s0 + $0x18] sm:$0xff]  ;;  %v3041_v7 = vld [vmem:[%s3911_s2 + $0x8] sm:$0xff] }
   0xb   :  { %v152_v19 = vperm.slane %v136_v11, 1  ;;  %vm164_vm1 = vcmp.eq.s32.totalorder %v2774_v2, %v148_v12  ;;  %vm165_vm2 = vcmp.eq.s32.totalorder %v2774_v2, %v149_v13  ;;  %vm166_vm3 = vcmp.eq.s32.totalorder %v2774_v2, %v150_v14  ;;  %v3066_v12 = vld [vmem:[%s3911_s2 + $0x10] sm:$0xff]  ;;  %s2356_s27 = sshll.u32 %s3917_s8, 4  ;;  %s2357_s27 = int_to_ptr.hbm [resolvable:$true] %s2356_s27 }
   0xc   :  { %vm167_vm4 = vcmp.eq.s32.totalorder %v2774_v2, %v151_v15  ;;  %2398 = vmatpush.msk.msra.mxu0 %vm164_vm1, %v2718_v21  ;;  %2403 = vmatpush.msk.msra.mxu1 %vm165_vm2, %v2718_v21  ;;  %vm170_vm5 = vcmp.eq.s32.totalorder %v2774_v2, %v154_v16  ;;  %vm171_vm6 = vcmp.eq.s32.totalorder %v2774_v2, %v155_v17  ;;  %v142_v23 = vperm.slane %v2817_v22, 5 }
   0xd   :  { %2408 = vmatpush.msk.msra.mxu2 %vm166_vm3, %v2718_v21  ;;  %2413 = vmatpush.msk.msra.mxu3 %vm167_vm4, %v2718_v21  ;;  %vm169_vm7 = vcmp.eq.s32.totalorder %v2774_v2, %v153_v18  ;;  %vm168_vm8 = vcmp.eq.s32.totalorder %v2774_v2, %v152_v19  ;;  %v143_v24 = vperm.slane %v2817_v22, 7  ;;  %v141_v28 = vperm.slane %v2817_v22, 3 }
   0xe   :  { %2399 = vmatmul.msk.f32.vlgmr.msra.gmra.mxu0 %vm220_vm0, %v2796_v20  ;;  %2404 = vmatmul.msk.f32.vlgmr.msra.gmra.mxu1 %vm220_vm0, %v2796_v20  ;;  %v158_v25 = vperm.slane %v142_v23, 1  ;;  %v140_v29 = vperm.slane %v2817_v22, 1  ;;  %v146_v35 = vperm.slane %v2885_v34, 5  ;;  %v147_v36 = vperm.slane %v2885_v34, 7 }
   0xf   :  { %2409 = vmatmul.msk.f32.vlgmr.msra.gmra.mxu2 %vm220_vm0, %v2796_v20  ;;  %2414 = vmatmul.msk.f32.vlgmr.msra.gmra.mxu3 %vm220_vm0, %v2796_v20  ;;  %v159_v26 = vperm.slane %v143_v24, 1  ;;  %v157_v30 = vperm.slane %v141_v28, 1  ;;  %v145_v39 = vperm.slane %v2885_v34, 3  ;;  %v144_v40 = vperm.slane %v2885_v34, 1 }
  0x10   :  { %2428 = vmatpush.msk.msrb.mxu2 %vm170_vm5, %v2718_v21  ;;  %2433 = vmatpush.msk.msrb.mxu3 %vm171_vm6, %v2718_v21  ;;  %vm174_vm9 = vcmp.eq.s32.totalorder %v2774_v2, %v158_v25  ;;  %v156_v31 = vperm.slane %v140_v29, 1  ;;  %v162_v37 = vperm.slane %v146_v35, 1  ;;  %v163_v38 = vperm.slane %v147_v36, 1 }
  0x11   :  { %2423 = vmatpush.msk.msrb.mxu1 %vm169_vm7, %v2718_v21  ;;  %2418 = vmatpush.msk.msrb.mxu0 %vm168_vm8, %v2718_v21  ;;  %vm175_vm10 = vcmp.eq.s32.totalorder %v2774_v2, %v159_v26  ;;  %vm173_vm11 = vcmp.eq.s32.totalorder %v2774_v2, %v157_v30  ;;  %v161_v41 = vperm.slane %v145_v39, 1  ;;  %v160_v42 = vperm.slane %v144_v40, 1 }
  0x12   :  { %2448 = vmatpush.msk.msra.mxu2 %vm174_vm9, %v2718_v21  ;;  %2453 = vmatpush.msk.msra.mxu3 %vm175_vm10, %v2718_v21  ;;  %vm172_vm12 = vcmp.eq.s32.totalorder %v2774_v2, %v156_v31  ;;  %vm178_vm13 = vcmp.eq.s32.totalorder %v2774_v2, %v162_v37  ;;  %vm179_vm14 = vcmp.eq.s32.totalorder %v2774_v2, %v163_v38  ;;  %v54_v43 = vperm.slane %v2772_v1, 4 }
  0x13   :  { %2443 = vmatpush.msk.msra.mxu1 %vm173_vm11, %v2718_v21  ;;  %2438 = vmatpush.msk.msra.mxu0 %vm172_vm12, %v2718_v21  ;;  %vm177_vm15 = vcmp.eq.s32.totalorder %v2774_v2, %v161_v41  ;;  %vm176_vm1 = vcmp.eq.s32.totalorder %v2774_v2, %v160_v42  ;;  %v55_v44 = vperm.slane %v2772_v1, 6  ;;  %v53_v47 = vperm.slane %v2772_v1, 2 }
  0x14   :  { %v70_v45 = vperm.slane %v54_v43, 0  ;;  %v52_v48 = vperm.slane %v2772_v1, 0  ;;  %v58_v51 = vperm.slane %v2779_v3, 4  ;;  %v59_v52 = vperm.slane %v2779_v3, 6 }
  0x15   :  { %v71_v46 = vperm.slane %v55_v44, 0  ;;  %v69_v49 = vperm.slane %v53_v47, 0  ;;  %v57_v55 = vperm.slane %v2779_v3, 2  ;;  %v56_v56 = vperm.slane %v2779_v3, 0 }
  0x16   :  { %2400 = vmatmul.msk.f32.gmra.mxu0 %vm220_vm0, %v2828_v27  ;;  %2405 = vmatmul.msk.f32.gmra.mxu1 %vm220_vm0, %v2828_v27  ;;  %vm86_vm2 = vcmp.eq.s32.totalorder %v2774_v2, %v70_v45  ;;  %v68_v50 = vperm.slane %v52_v48, 0  ;;  %v74_v53 = vperm.slane %v58_v51, 0  ;;  %v75_v54 = vperm.slane %v59_v52, 0 }
  0x17   :  { %2410 = vmatmul.msk.f32.gmra.mxu2 %vm220_vm0, %v2828_v27  ;;  %2415 = vmatmul.msk.f32.gmra.mxu3 %vm220_vm0, %v2828_v27  ;;  %vm87_vm3 = vcmp.eq.s32.totalorder %v2774_v2, %v71_v46  ;;  %vm85_vm4 = vcmp.eq.s32.totalorder %v2774_v2, %v69_v49  ;;  %v73_v57 = vperm.slane %v57_v55, 0  ;;  %v72_v58 = vperm.slane %v56_v56, 0  ;;  %v1211_v49 = vld [vmem:[#allocation2 + $0x110] sm:$0x7] }
  0x18   :  { %vm84_vm5 = vcmp.eq.s32.totalorder %v2774_v2, %v68_v50  ;;  %vm90_vm6 = vcmp.eq.s32.totalorder %v2774_v2, %v74_v53  ;;  %vm91_vm7 = vcmp.eq.s32.totalorder %v2774_v2, %v75_v54  ;;  %v62_v62 = vperm.slane %v2817_v22, 4  ;;  %v1212_v50 = vld [vmem:[#allocation2 + $0x118] sm:$0x7] }
  0x19   :  { %vm89_vm8 = vcmp.eq.s32.totalorder %v2774_v2, %v73_v57  ;;  %vm88_vm9 = vcmp.eq.s32.totalorder %v2774_v2, %v72_v58  ;;  %v63_v63 = vperm.slane %v2817_v22, 6  ;;  %v61_v13 = vperm.slane %v2817_v22, 2  ;;  %v1195_v57 = vld [vmem:[#allocation2 + $0x90] sm:$0xff]  ;;  %v1196_v58 = vld [vmem:[#allocation2 + $0x98] sm:$0xff] }
  0x1a   :  { %v78_v0 = vperm.slane %v62_v62, 0  ;;  %v60_v14 = vperm.slane %v2817_v22, 0  ;;  %v3093_v22 = vld [vmem:[%s3911_s2 + $0x18] sm:$0xff]  ;;  %v67_v28 = vperm.slane %v2885_v34, 6  ;;  %v65_v40 = vperm.slane %v2885_v34, 2 }
  0x1b   :  { %v79_v1 = vperm.slane %v63_v63, 0  ;;  %v77_v15 = vperm.slane %v61_v13, 0  ;;  %v64_v41 = vperm.slane %v2885_v34, 0 }
  0x1c   :  { %vm94_vm10 = vcmp.eq.s32.totalorder %v2774_v2, %v78_v0  ;;  %v76_v16 = vperm.slane %v60_v14, 0  ;;  %v83_v30 = vperm.slane %v67_v28, 0  ;;  %v81_v42 = vperm.slane %v65_v40, 0  ;;  %v1210_v0 = vld [vmem:[#allocation2 + $0x108] sm:$0x7]  ;;  %v1180_v28 = vld [vmem:[#allocation2 + $0x18] sm:$0xff] }
  0x1d   :  { %vm95_vm11 = vcmp.eq.s32.totalorder %v2774_v2, %v79_v1  ;;  %vm93_vm12 = vcmp.eq.s32.totalorder %v2774_v2, %v77_v15  ;;  %v80_v43 = vperm.slane %v64_v41, 0  ;;  %v1209_v1 = vld [vmem:[#allocation2 + $0x100] sm:$0x7] }
  0x1e   :  { %2401 = vmatmul.msk.f32.gmra.mxu0 %vm220_vm0, %v2847_v32  ;;  %2406 = vmatmul.msk.f32.gmra.mxu1 %vm220_vm0, %v2847_v32 }
  0x1f   :  { %2411 = vmatmul.msk.f32.gmra.mxu2 %vm220_vm0, %v2847_v32  ;;  %2416 = vmatmul.msk.f32.gmra.mxu3 %vm220_vm0, %v2847_v32 }
  0x26   :  { %2402 = vmatmul.msk.f32.gmra.mxu0 %vm220_vm0, %v2864_v33  ;;  %2407 = vmatmul.msk.f32.gmra.mxu1 %vm220_vm0, %v2864_v33 }
  0x27   :  { %2412 = vmatmul.msk.f32.gmra.mxu2 %vm220_vm0, %v2864_v33  ;;  %2417 = vmatmul.msk.f32.gmra.mxu3 %vm220_vm0, %v2864_v33 }
  0x2e   :  { %2419 = vmatmul.msk.f32.vlgmr.msrb.gmra.mxu0 %vm220_vm0, %v2796_v20  ;;  %2424 = vmatmul.msk.f32.vlgmr.msrb.gmra.mxu1 %vm220_vm0, %v2796_v20 }
  0x2f   :  { %2429 = vmatmul.msk.f32.vlgmr.msrb.gmra.mxu2 %vm220_vm0, %v2796_v20  ;;  %2434 = vmatmul.msk.f32.vlgmr.msrb.gmra.mxu3 %vm220_vm0, %v2796_v20 }
  0x30   :  { %2468 = vmatpush.msk.msrb.mxu2 %vm178_vm13, %v2718_v21  ;;  %2473 = vmatpush.msk.msrb.mxu3 %vm179_vm14, %v2718_v21  ;;  %vm92_vm13 = vcmp.eq.s32.totalorder %v2774_v2, %v76_v16 }
  0x31   :  { %2463 = vmatpush.msk.msrb.mxu1 %vm177_vm15, %v2718_v21  ;;  %2458 = vmatpush.msk.msrb.mxu0 %vm176_vm1, %v2718_v21  ;;  %vm99_vm15 = vcmp.eq.s32.totalorder %v2774_v2, %v83_v30  ;;  %vm97_vm1 = vcmp.eq.s32.totalorder %v2774_v2, %v81_v42  ;;  %v1193_v30 = vld [vmem:[#allocation2 + $0x80] sm:$0xff] }
  0x36   :  { %2420 = vmatmul.msk.f32.gmra.mxu0 %vm220_vm0, %v2828_v27  ;;  %2425 = vmatmul.msk.f32.gmra.mxu1 %vm220_vm0, %v2828_v27 }
  0x37   :  { %2430 = vmatmul.msk.f32.gmra.mxu2 %vm220_vm0, %v2828_v27  ;;  %2435 = vmatmul.msk.f32.gmra.mxu3 %vm220_vm0, %v2828_v27 }
  0x3e   :  { %2421 = vmatmul.msk.f32.gmra.mxu0 %vm220_vm0, %v2847_v32  ;;  %2426 = vmatmul.msk.f32.gmra.mxu1 %vm220_vm0, %v2847_v32 }
  0x3f   :  { %2431 = vmatmul.msk.f32.gmra.mxu2 %vm220_vm0, %v2847_v32  ;;  %2436 = vmatmul.msk.f32.gmra.mxu3 %vm220_vm0, %v2847_v32 }
  0x46   :  { %2422 = vmatmul.msk.f32.gmra.mxu0 %vm220_vm0, %v2864_v33  ;;  %2427 = vmatmul.msk.f32.gmra.mxu1 %vm220_vm0, %v2864_v33 }
  0x47   :  { %2432 = vmatmul.msk.f32.gmra.mxu2 %vm220_vm0, %v2864_v33  ;;  %2437 = vmatmul.msk.f32.gmra.mxu3 %vm220_vm0, %v2864_v33 }
  0x4e   :  { %2439 = vmatmul.msk.f32.vlgmr.msra.gmra.mxu0 %vm220_vm0, %v2796_v20  ;;  %2444 = vmatmul.msk.f32.vlgmr.msra.gmra.mxu1 %vm220_vm0, %v2796_v20 }
  0x4f   :  { %2449 = vmatmul.msk.f32.vlgmr.msra.gmra.mxu2 %vm220_vm0, %v2796_v20  ;;  %2454 = vmatmul.msk.f32.vlgmr.msra.gmra.mxu3 %vm220_vm0, %v2796_v20 }
  0x50   :  { %2488 = vmatpush.msk.msra.mxu2 %vm86_vm2, %v2718_v21  ;;  %2493 = vmatpush.msk.msra.mxu3 %vm87_vm3, %v2718_v21  ;;  %vm96_vm2 = vcmp.eq.s32.totalorder %v2774_v2, %v80_v43  ;;  %vm1238_vm3 = vcmask 1042432  }
  0x51   :  { %2483 = vmatpush.msk.msra.mxu1 %vm85_vm4, %v2718_v21  ;;  %2478 = vmatpush.msk.msra.mxu0 %vm84_vm5, %v2718_v21  ;;  %vm1225_vm4 = vcmask 154624   ;;  %vm2326_vm5 = vcmask 1041408  }
  0x56   :  { %2440 = vmatmul.msk.f32.gmra.mxu0 %vm220_vm0, %v2828_v27  ;;  %2445 = vmatmul.msk.f32.gmra.mxu1 %vm220_vm0, %v2828_v27 }
  0x57   :  { %2450 = vmatmul.msk.f32.gmra.mxu2 %vm220_vm0, %v2828_v27  ;;  %2455 = vmatmul.msk.f32.gmra.mxu3 %vm220_vm0, %v2828_v27 }
  0x5e   :  { %2441 = vmatmul.msk.f32.gmra.mxu0 %vm220_vm0, %v2847_v32  ;;  %2446 = vmatmul.msk.f32.gmra.mxu1 %vm220_vm0, %v2847_v32 }
  0x5f   :  { %2451 = vmatmul.msk.f32.gmra.mxu2 %vm220_vm0, %v2847_v32  ;;  %2456 = vmatmul.msk.f32.gmra.mxu3 %vm220_vm0, %v2847_v32 }
  0x66   :  { %2442 = vmatmul.msk.f32.gmra.mxu0 %vm220_vm0, %v2864_v33  ;;  %2447 = vmatmul.msk.f32.gmra.mxu1 %vm220_vm0, %v2864_v33 }
  0x67   :  { %2452 = vmatmul.msk.f32.gmra.mxu2 %vm220_vm0, %v2864_v33  ;;  %2457 = vmatmul.msk.f32.gmra.mxu3 %vm220_vm0, %v2864_v33 }
  0x6e   :  { %2459 = vmatmul.msk.f32.vlgmr.msrb.gmra.mxu0 %vm220_vm0, %v2796_v20  ;;  %2464 = vmatmul.msk.f32.vlgmr.msrb.gmra.mxu1 %vm220_vm0, %v2796_v20 }
  0x6f   :  { %2469 = vmatmul.msk.f32.vlgmr.msrb.gmra.mxu2 %vm220_vm0, %v2796_v20  ;;  %2474 = vmatmul.msk.f32.vlgmr.msrb.gmra.mxu3 %vm220_vm0, %v2796_v20 }
  0x70   :  { %2508 = vmatpush.msk.msrb.mxu2 %vm90_vm6, %v2718_v21  ;;  %2513 = vmatpush.msk.msrb.mxu3 %vm91_vm7, %v2718_v21  ;;  %vm2328_vm6 = vcmask 1045508   ;;  %vm2330_vm7 = vcmask 1043456  }
  0x71   :  { %2503 = vmatpush.msk.msrb.mxu1 %vm89_vm8, %v2718_v21  ;;  %2498 = vmatpush.msk.msrb.mxu0 %vm88_vm9, %v2718_v21 }
  0x76   :  { %2460 = vmatmul.msk.f32.gmra.mxu0 %vm220_vm0, %v2828_v27  ;;  %2465 = vmatmul.msk.f32.gmra.mxu1 %vm220_vm0, %v2828_v27 }
  0x77   :  { %2470 = vmatmul.msk.f32.gmra.mxu2 %vm220_vm0, %v2828_v27  ;;  %2475 = vmatmul.msk.f32.gmra.mxu3 %vm220_vm0, %v2828_v27  ;;  %v66_v27 = vperm.slane %v2885_v34, 4 }
  0x79   :  { %v82_v29 = vperm.slane %v66_v27, 0  ;;  %v1179_v27 = vld [vmem:[#allocation2 + $0x10] sm:$0xff] }
  0x7b   :  { %vm98_vm14 = vcmp.eq.s32.totalorder %v2774_v2, %v82_v29  ;;  %v1194_v29 = vld [vmem:[#allocation2 + $0x88] sm:$0xff] }
  0x7e   :  { %2461 = vmatmul.msk.f32.gmra.mxu0 %vm220_vm0, %v2847_v32  ;;  %2466 = vmatmul.msk.f32.gmra.mxu1 %vm220_vm0, %v2847_v32 }
  0x7f   :  { %2471 = vmatmul.msk.f32.gmra.mxu2 %vm220_vm0, %v2847_v32  ;;  %2476 = vmatmul.msk.f32.gmra.mxu3 %vm220_vm0, %v2847_v32 }
  0x86   :  { %2462 = vmatmul.msk.f32.gmra.mxu0 %vm220_vm0, %v2864_v33  ;;  %2467 = vmatmul.msk.f32.gmra.mxu1 %vm220_vm0, %v2864_v33 }
  0x87   :  { %2472 = vmatmul.msk.f32.gmra.mxu2 %vm220_vm0, %v2864_v33  ;;  %2477 = vmatmul.msk.f32.gmra.mxu3 %vm220_vm0, %v2864_v33 }
  0x8b   :  { %v3011_v59 = vpop.f32.mrf.mxu0  ;;  %v3013_v60 = vpop.f32.mrf.mxu1 }
  0x8e   :  { %2479 = vmatmul.msk.f32.vlgmr.msra.gmra.mxu0 %vm220_vm0, %v3018_v61  ;;  %2484 = vmatmul.msk.f32.vlgmr.msra.gmra.mxu1 %vm220_vm0, %v3018_v61 }
  0x8f   :  { %2489 = vmatmul.msk.f32.vlgmr.msra.gmra.mxu2 %vm220_vm0, %v3018_v61  ;;  %2494 = vmatmul.msk.f32.vlgmr.msra.gmra.mxu3 %vm220_vm0, %v3018_v61 }
  0x90   :  { %2528 = vmatpush.msk.msra.mxu2 %vm94_vm10, %v2718_v21  ;;  %2533 = vmatpush.msk.msra.mxu3 %vm95_vm11, %v2718_v21 }
  0x91   :  { %2523 = vmatpush.msk.msra.mxu1 %vm93_vm12, %v2718_v21  ;;  %2518 = vmatpush.msk.msra.mxu0 %vm92_vm13, %v2718_v21 }
  0x92   :  { %v3030_v3 = vpop.f32.mrf.mxu2  ;;  %v3032_v4 = vpop.f32.mrf.mxu3 }
  0x93   :  { %v3034_v5 = vpop.f32.mrf.mxu0  ;;  %v3036_v6 = vpop.f32.mrf.mxu1 }
  0x96   :  { %2480 = vmatmul.msk.f32.gmra.mxu0 %vm220_vm0, %v3041_v7  ;;  %2485 = vmatmul.msk.f32.gmra.mxu1 %vm220_vm0, %v3041_v7 }
  0x97   :  { %2490 = vmatmul.msk.f32.gmra.mxu2 %vm220_vm0, %v3041_v7  ;;  %2495 = vmatmul.msk.f32.gmra.mxu3 %vm220_vm0, %v3041_v7 }
  0x9a   :  { %v3055_v8 = vpop.f32.mrf.mxu2  ;;  %v3057_v9 = vpop.f32.mrf.mxu3 }
  0x9b   :  { %v3059_v10 = vpop.f32.mrf.mxu0  ;;  %v3061_v11 = vpop.f32.mrf.mxu1 }
  0x9e   :  { %2481 = vmatmul.msk.f32.gmra.mxu0 %vm220_vm0, %v3066_v12  ;;  %2486 = vmatmul.msk.f32.gmra.mxu1 %vm220_vm0, %v3066_v12 }
  0x9f   :  { %2491 = vmatmul.msk.f32.gmra.mxu2 %vm220_vm0, %v3066_v12  ;;  %2496 = vmatmul.msk.f32.gmra.mxu3 %vm220_vm0, %v3066_v12 }
  0xa2   :  { %v3082_v17 = vpop.f32.mrf.mxu2  ;;  %v3084_v18 = vpop.f32.mrf.mxu3 }
  0xa3   :  { %v3086_v19 = vpop.f32.mrf.mxu0  ;;  %v3088_v20 = vpop.f32.mrf.mxu1 }
  0xa6   :  { %2482 = vmatmul.msk.f32.gmra.mxu0 %vm220_vm0, %v3093_v22  ;;  %2487 = vmatmul.msk.f32.gmra.mxu1 %vm220_vm0, %v3093_v22 }
  0xa7   :  { %2492 = vmatmul.msk.f32.gmra.mxu2 %vm220_vm0, %v3093_v22  ;;  %2497 = vmatmul.msk.f32.gmra.mxu3 %vm220_vm0, %v3093_v22 }
  0xaa   :  { %v3103_v23 = vpop.f32.mrf.mxu2  ;;  %v3105_v24 = vpop.f32.mrf.mxu3 }
  0xab   :  { %v3107_v25 = vpop.f32.mrf.mxu0  ;;  %v3109_v26 = vpop.f32.mrf.mxu1 }
  0xac   :  { %3918 = vst [vmem:[#allocation8_spill] sm:$0xff] %v3109_v26 }
  0xae   :  { %2499 = vmatmul.msk.f32.vlgmr.msrb.gmra.mxu0 %vm220_vm0, %v3018_v61  ;;  %2504 = vmatmul.msk.f32.vlgmr.msrb.gmra.mxu1 %vm220_vm0, %v3018_v61 }
  0xaf   :  { %2509 = vmatmul.msk.f32.vlgmr.msrb.gmra.mxu2 %vm220_vm0, %v3018_v61  ;;  %2514 = vmatmul.msk.f32.vlgmr.msrb.gmra.mxu3 %vm220_vm0, %v3018_v61 }
  0xb0   :  { %2548 = vmatpush.msk.msrb.mxu2 %vm98_vm14, %v2718_v21  ;;  %2553 = vmatpush.msk.msrb.mxu3 %vm99_vm15, %v2718_v21 }
  0xb1   :  { %2543 = vmatpush.msk.msrb.mxu1 %vm97_vm1, %v2718_v21  ;;  %2538 = vmatpush.msk.msrb.mxu0 %vm96_vm2, %v2718_v21 }
  0xb2   :  { %v3121_v31 = vpop.f32.mrf.mxu2  ;;  %v3123_v32 = vpop.f32.mrf.mxu3 }
  0xb3   :  { %3919 = vst [vmem:[#allocation9_spill] sm:$0xff] %v3121_v31  ;;  %v3125_v33 = vpop.f32.mrf.mxu0  ;;  %v3127_v35 = vpop.f32.mrf.mxu1 }
  0xb4   :  { %3920 = vst [vmem:[#allocation10_spill] sm:$0xff] %v3123_v32 }
  0xb6   :  { %2500 = vmatmul.msk.f32.gmra.mxu0 %vm220_vm0, %v3041_v7  ;;  %2505 = vmatmul.msk.f32.gmra.mxu1 %vm220_vm0, %v3041_v7 }
  0xb7   :  { %2510 = vmatmul.msk.f32.gmra.mxu2 %vm220_vm0, %v3041_v7  ;;  %2515 = vmatmul.msk.f32.gmra.mxu3 %vm220_vm0, %v3041_v7 }
  0xba   :  { %v3141_v36 = vpop.f32.mrf.mxu2  ;;  %v3143_v37 = vpop.f32.mrf.mxu3 }
  0xbb   :  { %3921 = vst [vmem:[#allocation11_spill] sm:$0xff] %v3141_v36  ;;  %v3145_v38 = vpop.f32.mrf.mxu0  ;;  %v3147_v39 = vpop.f32.mrf.mxu1  ;;  %v1190_v36 = vld [vmem:[#allocation2 + $0x68] sm:$0xff] }
  0xbc   :  { %3922 = vst [vmem:[#allocation12_spill] sm:$0xff] %v3143_v37 }
  0xbe   :  { %2501 = vmatmul.msk.f32.gmra.mxu0 %vm220_vm0, %v3066_v12  ;;  %2506 = vmatmul.msk.f32.gmra.mxu1 %vm220_vm0, %v3066_v12 }
  0xbf   :  { %2511 = vmatmul.msk.f32.gmra.mxu2 %vm220_vm0, %v3066_v12  ;;  %2516 = vmatmul.msk.f32.gmra.mxu3 %vm220_vm0, %v3066_v12 }
  0xc2   :  { %v3163_v34 = vpop.f32.mrf.mxu2  ;;  %v3165_v44 = vpop.f32.mrf.mxu3 }
  0xc3   :  { %3923 = vst [vmem:[#allocation13_spill] sm:$0xff] %v3163_v34  ;;  %v3167_v45 = vpop.f32.mrf.mxu0  ;;  %v3169_v46 = vpop.f32.mrf.mxu1  ;;  %v1192_v34 = vld [vmem:[#allocation2 + $0x78] sm:$0xff] }
  0xc4   :  { %3924 = vst [vmem:[#allocation14_spill] sm:$0xff] %v3165_v44 }
  0xc5   :  { %3925 = vst [vmem:[#allocation15_spill] sm:$0xff] %v3167_v45 }
  0xc6   :  { %3926 = vst [vmem:[#allocation16_spill] sm:$0xff] %v3169_v46  ;;  %2502 = vmatmul.msk.f32.gmra.mxu0 %vm220_vm0, %v3093_v22  ;;  %2507 = vmatmul.msk.f32.gmra.mxu1 %vm220_vm0, %v3093_v22 }
  0xc7   :  { %2512 = vmatmul.msk.f32.gmra.mxu2 %vm220_vm0, %v3093_v22  ;;  %2517 = vmatmul.msk.f32.gmra.mxu3 %vm220_vm0, %v3093_v22 }
  0xca   :  { %v3179_v2 = vpop.f32.mrf.mxu2  ;;  %v3181_v21 = vpop.f32.mrf.mxu3 }
  0xcb   :  { %3927 = vst [vmem:[#allocation17_spill] sm:$0xff] %v3179_v2  ;;  %v3183_v47 = vpop.f32.mrf.mxu0  ;;  %v3185_v48 = vpop.f32.mrf.mxu1  ;;  %v1221_v2 = vld [vmem:[#allocation2 + $0x160] sm:$0x7] }
  0xcc   :  { %3928 = vst [vmem:[#allocation18_spill] sm:$0xff] %v3181_v21  ;;  %v1222_v21 = vld [vmem:[#allocation2 + $0x168] sm:$0x7] }
  0xcd   :  { %3929 = vst [vmem:[#allocation19_spill] sm:$0xff] %v3183_v47  ;;  %v1186_v47 = vld [vmem:[#allocation2 + $0x48] sm:$0xff] }
  0xce   :  { %3930 = vst [vmem:[#allocation20_spill] sm:$0xff] %v3185_v48  ;;  %2519 = vmatmul.msk.f32.vlgmr.msra.gmra.mxu0 %vm220_vm0, %v3018_v61  ;;  %2524 = vmatmul.msk.f32.vlgmr.msra.gmra.mxu1 %vm220_vm0, %v3018_v61  ;;  %v1185_v48 = vld [vmem:[#allocation2 + $0x40] sm:$0xff] }
  0xcf   :  { %2529 = vmatmul.msk.f32.vlgmr.msra.gmra.mxu2 %vm220_vm0, %v3018_v61  ;;  %2534 = vmatmul.msk.f32.vlgmr.msra.gmra.mxu3 %vm220_vm0, %v3018_v61 }
  0xd0   :  { %2568 = vmatpush.msk.msra.mxu2 %vm1238_vm3, %v1211_v49  ;;  %2573 = vmatpush.msk.msra.mxu3 %vm1238_vm3, %v1212_v50  ;;  %v1177_v49 = vld [vmem:[#allocation2] sm:$0xff]  ;;  %v1178_v50 = vld [vmem:[#allocation2 + $0x8] sm:$0xff] }
  0xd1   :  { %2563 = vmatpush.msk.msra.mxu1 %vm1238_vm3, %v1210_v0  ;;  %2558 = vmatpush.msk.msra.mxu0 %vm1238_vm3, %v1209_v1 }
  0xd2   :  { %v3197_v51 = vpop.f32.mrf.mxu2  ;;  %v3199_v52 = vpop.f32.mrf.mxu3  ;;  %1359 = vmatpush.msra.mxu2 %v1195_v57  ;;  %1388 = vmatpush.msra.mxu3 %v1196_v58  ;;  %v1215_v57 = vld [vmem:[#allocation2 + $0x130] sm:$0x7]  ;;  %v1216_v58 = vld [vmem:[#allocation2 + $0x138] sm:$0x7] }
  0xd3   :  { %3931 = vst [vmem:[#allocation21_spill] sm:$0xff] %v3197_v51  ;;  %v3201_v53 = vpop.f32.mrf.mxu0  ;;  %v3203_v54 = vpop.f32.mrf.mxu1  ;;  %1330 = vmatpush.msra.mxu1 %v1194_v29  ;;  %1301 = vmatpush.msra.mxu0 %v1193_v30  ;;  %v2719_v29 = vmov 0  }
  0xd4   :  { %3932 = vst [vmem:[#allocation22_spill] sm:$0xff] %v3199_v52  ;;  %1360 = vmatpush.msra.mxu2 %v1179_v27  ;;  %1389 = vmatpush.msra.mxu3 %v1180_v28 }
  0xd5   :  { %3933 = vst [vmem:[#allocation23_spill] sm:$0xff] %v3201_v53  ;;  %1302 = vmatpush.msra.mxu0 %v1177_v49  ;;  %1331 = vmatpush.msra.mxu1 %v1178_v50 }
  0xd6   :  { %3934 = vst [vmem:[#allocation24_spill] sm:$0xff] %v3203_v54  ;;  %2520 = vmatmul.msk.f32.gmra.mxu0 %vm220_vm0, %v3041_v7  ;;  %2525 = vmatmul.msk.f32.gmra.mxu1 %vm220_vm0, %v3041_v7 }
  0xd7   :  { %2530 = vmatmul.msk.f32.gmra.mxu2 %vm220_vm0, %v3041_v7  ;;  %2535 = vmatmul.msk.f32.gmra.mxu3 %vm220_vm0, %v3041_v7 }
  0xd8   :  { %2661 = vset.pattern.permute.xlu1 %v2719_v29  ;;  %2660 = vset.pattern.permute.xlu0 %v2719_v29 }
  0xd9   :  { %2662 = vset.pattern.permute.xlu2 %v2719_v29  ;;  %v1200_v29 = vld [vmem:[#allocation2 + $0xb8] sm:$0xff] }
  0xda   :  { %v3213_v55 = vpop.f32.mrf.mxu2  ;;  %v3215_v56 = vpop.f32.mrf.mxu3 }
  0xdb   :  { %3935 = vst [vmem:[#allocation25_spill] sm:$0xff] %v3213_v55  ;;  %v3217_v62 = vpop.f32.mrf.mxu0  ;;  %v3219_v63 = vpop.f32.mrf.mxu1  ;;  %v1201_v55 = vld [vmem:[#allocation2 + $0xc0] sm:$0xff] }
  0xdc   :  { %3936 = vst [vmem:[#allocation26_spill] sm:$0xff] %v3215_v56  ;;  %v1202_v56 = vld [vmem:[#allocation2 + $0xc8] sm:$0xff] }
  0xdd   :  { %3937 = vst [vmem:[#allocation27_spill] sm:$0xff] %v3217_v62  ;;  %v1208_v62 = vld [vmem:[#allocation2 + $0xf8] sm:$0xff] }
  0xde   :  { %3938 = vst [vmem:[#allocation28_spill] sm:$0xff] %v3219_v63  ;;  %2521 = vmatmul.msk.f32.gmra.mxu0 %vm220_vm0, %v3066_v12  ;;  %2526 = vmatmul.msk.f32.gmra.mxu1 %vm220_vm0, %v3066_v12  ;;  %v1207_v63 = vld [vmem:[#allocation2 + $0xf0] sm:$0xff] }
  0xdf   :  { %2531 = vmatmul.msk.f32.gmra.mxu2 %vm220_vm0, %v3066_v12  ;;  %2536 = vmatmul.msk.f32.gmra.mxu3 %vm220_vm0, %v3066_v12 }
  0xe2   :  { %v3231_v13 = vpop.f32.mrf.mxu2  ;;  %v3233_v14 = vpop.f32.mrf.mxu3 }
  0xe3   :  { %3939 = vst [vmem:[#allocation29_spill] sm:$0xff] %v3231_v13  ;;  %v3235_v15 = vpop.f32.mrf.mxu0  ;;  %v3237_v16 = vpop.f32.mrf.mxu1  ;;  %v1188_v13 = vld [vmem:[#allocation2 + $0x58] sm:$0xff] }
  0xe4   :  { %3940 = vst [vmem:[#allocation30_spill] sm:$0xff] %v3233_v14  ;;  %v1187_v14 = vld [vmem:[#allocation2 + $0x50] sm:$0xff] }
  0xe5   :  { %3941 = vst [vmem:[#allocation31_spill] sm:$0xff] %v3235_v15 }
  0xe6   :  { %3942 = vst [vmem:[#allocation32_spill] sm:$0xff] %v3237_v16  ;;  %2522 = vmatmul.msk.f32.gmra.mxu0 %vm220_vm0, %v3093_v22  ;;  %2527 = vmatmul.msk.f32.gmra.mxu1 %vm220_vm0, %v3093_v22 }
  0xe7   :  { %2532 = vmatmul.msk.f32.gmra.mxu2 %vm220_vm0, %v3093_v22  ;;  %2537 = vmatmul.msk.f32.gmra.mxu3 %vm220_vm0, %v3093_v22 }
  0xea   :  { %v3247_v40 = vpop.f32.mrf.mxu2  ;;  %v3249_v41 = vpop.f32.mrf.mxu3 }
  0xeb   :  { %3943 = vst [vmem:[#allocation33_spill] sm:$0xff] %v3247_v40  ;;  %v3251_v42 = vpop.f32.mrf.mxu0  ;;  %v3253_v43 = vpop.f32.mrf.mxu1 }
  0xec   :  { %3944 = vst [vmem:[#allocation34_spill] sm:$0xff] %v3249_v41  ;;  %v1217_v41 = vld [vmem:[#allocation2 + $0x140] sm:$0x7] }
  0xed   :  { %3945 = vst [vmem:[#allocation35_spill] sm:$0xff] %v3251_v42  ;;  %v3361_v42 = vld [vmem:[%s3913_s4 + $0x8] sm:$0xff] }
  0xee   :  { %3946 = vst [vmem:[#allocation36_spill] sm:$0xff] %v3253_v43  ;;  %2539 = vmatmul.msk.f32.vlgmr.msrb.gmra.mxu0 %vm220_vm0, %v3018_v61  ;;  %2544 = vmatmul.msk.f32.vlgmr.msrb.gmra.mxu1 %vm220_vm0, %v3018_v61 }
  0xef   :  { %2549 = vmatmul.msk.f32.vlgmr.msrb.gmra.mxu2 %vm220_vm0, %v3018_v61  ;;  %2554 = vmatmul.msk.f32.vlgmr.msrb.gmra.mxu3 %vm220_vm0, %v3018_v61  ;;  %v1816_v61 = vld [vmem:[%s3914_s5 + $0x8] sm:$0xff] }
  0xf0   :  { %2588 = vmatpush.msk.msrb.mxu2 %vm1238_vm3, %v1215_v57  ;;  %2593 = vmatpush.msk.msrb.mxu3 %vm1238_vm3, %v1216_v58  ;;  %v1199_v58 = vld [vmem:[#allocation2 + $0xb0] sm:$0xff] }
  0xf1   :  { %1826 = vperm.xlu1 %2661, %v1816_v61   ;;  %v1815_v61 = vld [vmem:[%s3914_s5] sm:$0xff] }
  0xf2   :  { %v3265_v0 = vpop.f32.mrf.mxu2  ;;  %v3267_v1 = vpop.f32.mrf.mxu3  ;;  %1475 = vmatpush.msrb.mxu2 %v1199_v58  ;;  %1504 = vmatpush.msrb.mxu3 %v1200_v29 }
  0xf3   :  { %3947 = vst [vmem:[#allocation37_spill] sm:$0xff] %v3265_v0  ;;  %v3269_v27 = vpop.f32.mrf.mxu0  ;;  %v3271_v28 = vpop.f32.mrf.mxu1  ;;  %v1184_v0 = vld [vmem:[#allocation2 + $0x38] sm:$0xff] }
  0xf4   :  { %3948 = vst [vmem:[#allocation38_spill] sm:$0xff] %v3267_v1  ;;  %v1214_v1 = vld [vmem:[#allocation2 + $0x128] sm:$0x7]  ;;  %1505 = vmatpush.msrb.mxu3 %v1184_v0 }
  0xf5   :  { %3949 = vst [vmem:[#allocation39_spill] sm:$0xff] %v3269_v27  ;;  %2583 = vmatpush.msk.msrb.mxu1 %vm1238_vm3, %v1214_v1  ;;  %v1203_v27 = vld [vmem:[#allocation2 + $0xd0] sm:$0xff] }
  0xf6   :  { %3950 = vst [vmem:[#allocation40_spill] sm:$0xff] %v3271_v28  ;;  %2540 = vmatmul.msk.f32.gmra.mxu0 %vm220_vm0, %v3041_v7  ;;  %2545 = vmatmul.msk.f32.gmra.mxu1 %vm220_vm0, %v3041_v7  ;;  %v3382_v28 = vld [vmem:[%s3913_s4 + $0x10] sm:$0xff] }
  0xf7   :  { %2550 = vmatmul.msk.f32.gmra.mxu2 %vm220_vm0, %v3041_v7  ;;  %2555 = vmatmul.msk.f32.gmra.mxu3 %vm220_vm0, %v3041_v7  ;;  %v1213_v7 = vld [vmem:[#allocation2 + $0x120] sm:$0x7] }
  0xf8   :  { %2578 = vmatpush.msk.msrb.mxu0 %vm1238_vm3, %v1213_v7  ;;  %v1197_v7 = vld [vmem:[#allocation2 + $0xa0] sm:$0xff] }
  0xf9   :  { %1821 = vperm.xlu1 %2661, %v1815_v61  }
  0xfa   :  { %v3284_v30 = vpop.f32.mrf.mxu2  ;;  %v3286_v49 = vpop.f32.mrf.mxu3  ;;  %1417 = vmatpush.msrb.mxu0 %v1197_v7  ;;  %v1182_v7 = vld [vmem:[#allocation2 + $0x28] sm:$0xff] }
  0xfb   :  { %3951 = vst [vmem:[#allocation41_spill] sm:$0xff] %v3284_v30  ;;  %v3288_v50 = vpop.f32.mrf.mxu0  ;;  %v3290_v57 = vpop.f32.mrf.mxu1  ;;  %v1183_v30 = vld [vmem:[#allocation2 + $0x30] sm:$0xff] }
  0xfc   :  { %3952 = vst [vmem:[#allocation42_spill] sm:$0xff] %v3286_v49  ;;  %v1818_v49 = vld [vmem:[%s3914_s5 + $0x18] sm:$0xff]  ;;  %1476 = vmatpush.msrb.mxu2 %v1183_v30 }
  0xfd   :  { %3953 = vst [vmem:[#allocation43_spill] sm:$0xff] %v3288_v50  ;;  %1836 = vperm.xlu0 %2660, %v1818_v49   ;;  %v1218_v50 = vld [vmem:[#allocation2 + $0x148] sm:$0x7] }
  0xfe   :  { %3954 = vst [vmem:[#allocation44_spill] sm:$0xff] %v3290_v57  ;;  %2541 = vmatmul.msk.f32.gmra.mxu0 %vm220_vm0, %v3066_v12  ;;  %2546 = vmatmul.msk.f32.gmra.mxu1 %vm220_vm0, %v3066_v12  ;;  %v1204_v57 = vld [vmem:[#allocation2 + $0xd8] sm:$0xff] }
  0xff   :  { %2551 = vmatmul.msk.f32.gmra.mxu2 %vm220_vm0, %v3066_v12  ;;  %2556 = vmatmul.msk.f32.gmra.mxu3 %vm220_vm0, %v3066_v12  ;;  %v1198_v12 = vld [vmem:[#allocation2 + $0xa8] sm:$0xff] }
 0x100   :  { %1446 = vmatpush.msrb.mxu1 %v1198_v12  ;;  %v1181_v12 = vld [vmem:[#allocation2 + $0x20] sm:$0xff] }
 0x101   :  { %1418 = vmatpush.msrb.mxu0 %v1181_v12 }
 0x102   :  { %v3305_v58 = vpop.f32.mrf.mxu2  ;;  %v3307_v29 = vpop.f32.mrf.mxu3  ;;  %1447 = vmatpush.msrb.mxu1 %v1182_v7 }
 0x103   :  { %3955 = vst [vmem:[#allocation45_spill] sm:$0xff] %v3305_v58  ;;  %v3309_v1 = vpop.f32.mrf.mxu0  ;;  %v3311_v61 = vpop.f32.mrf.mxu1  ;;  %v3335_v58 = vld [vmem:[%s3913_s4] sm:$0xff] }
 0x104   :  { %3956 = vst [vmem:[#allocation46_spill] sm:$0xff] %v3307_v29 }
 0x105   :  { %3957 = vst [vmem:[#allocation47_spill] sm:$0xff] %v3309_v1 }
 0x106   :  { %3958 = vst [vmem:[#allocation48_spill] sm:$0xff] %v3311_v61  ;;  %2542 = vmatmul.msk.f32.gmra.mxu0 %vm220_vm0, %v3093_v22  ;;  %2547 = vmatmul.msk.f32.gmra.mxu1 %vm220_vm0, %v3093_v22 }
 0x107   :  { %2552 = vmatmul.msk.f32.gmra.mxu2 %vm220_vm0, %v3093_v22  ;;  %2557 = vmatmul.msk.f32.gmra.mxu3 %vm220_vm0, %v3093_v22  ;;  %v1817_v22 = vld [vmem:[%s3914_s5 + $0x10] sm:$0xff]  ;;  %vm1974_vm0 = vcmask 261120  }
 0x108   :  { %1831 = vperm.xlu0 %2660, %v1817_v22  }
 0x10a   :  { %v3324_v49 = vpop.f32.mrf.mxu2  ;;  %v3326_v30 = vpop.f32.mrf.mxu3 }
 0x10b   :  { %3959 = vst [vmem:[#allocation49_spill] sm:$0xff] %v3324_v49  ;;  %v3328_v0 = vpop.f32.mrf.mxu0  ;;  %v3330_v29 = vpop.f32.mrf.mxu1  ;;  %v1220_v49 = vld [vmem:[#allocation2 + $0x158] sm:$0x7] }
 0x10c   :  { %3960 = vst [vmem:[#allocation50_spill] sm:$0xff] %v3326_v30  ;;  %v1219_v30 = vld [vmem:[#allocation2 + $0x150] sm:$0x7] }
 0x10e   :  { %2559 = vmatmul.msk.f32.vlgmr.msra.gmra.mxu0 %vm1225_vm4, %v3335_v58  ;;  %2564 = vmatmul.msk.f32.vlgmr.msra.gmra.mxu1 %vm1225_vm4, %v3335_v58 }
 0x10f   :  { %2569 = vmatmul.msk.f32.vlgmr.msra.gmra.mxu2 %vm1225_vm4, %v3335_v58  ;;  %2574 = vmatmul.msk.f32.vlgmr.msra.gmra.mxu3 %vm1225_vm4, %v3335_v58 }
 0x110   :  { %2608 = vmatpush.msk.msra.mxu2 %vm1238_vm3, %v1219_v30  ;;  %2613 = vmatpush.msk.msra.mxu3 %vm1238_vm3, %v1220_v49 }
 0x111   :  { %2603 = vmatpush.msk.msra.mxu1 %vm1238_vm3, %v1218_v50  ;;  %2598 = vmatpush.msk.msra.mxu0 %vm1238_vm3, %v1217_v41  ;;  %v3405_v41 = vld [vmem:[%s3913_s4 + $0x18] sm:$0xff] }
 0x112   :  { %v3350_v22 = vpop.f32.mrf.mxu2  ;;  %v3352_v12 = vpop.f32.mrf.mxu3  ;;  %1591 = vmatpush.msra.mxu2 %v1203_v27  ;;  %1620 = vmatpush.msra.mxu3 %v1204_v57 }
 0x113   :  { %v3354_v7 = vpop.f32.mrf.mxu0  ;;  %v3356_v43 = vpop.f32.mrf.mxu1  ;;  %1562 = vmatpush.msra.mxu1 %v1202_v56  ;;  %1533 = vmatpush.msra.mxu0 %v1201_v55  ;;  %v1223_v55 = vld [vmem:[#allocation2 + $0x170] sm:$0x7]  ;;  %v1224_v56 = vld [vmem:[#allocation2 + $0x178] sm:$0x7] }
 0x114   :  { %1592 = vmatpush.msra.mxu2 %v1187_v14  ;;  %1621 = vmatpush.msra.mxu3 %v1188_v13  ;;  %v759_v31 = vadd.f32 %v3356_v43, %v3036_v6 }
 0x115   :  { %1534 = vmatpush.msra.mxu0 %v1185_v48  ;;  %1563 = vmatpush.msra.mxu1 %v1186_v47 }
 0x116   :  { %2560 = vmatmul.msk.f32.gmra.mxu0 %vm1225_vm4, %v3361_v42  ;;  %2565 = vmatmul.msk.f32.gmra.mxu1 %vm1225_vm4, %v3361_v42 }
 0x117   :  { %2570 = vmatmul.msk.f32.gmra.mxu2 %vm1225_vm4, %v3361_v42  ;;  %2575 = vmatmul.msk.f32.gmra.mxu3 %vm1225_vm4, %v3361_v42 }
 0x11a   :  { %v3371_v49 = vpop.f32.mrf.mxu2  ;;  %v3373_v30 = vpop.f32.mrf.mxu3 }
 0x11b   :  { %v3375_v61 = vpop.f32.mrf.mxu0  ;;  %v3377_v1 = vpop.f32.mrf.mxu1 }
 0x11e   :  { %2561 = vmatmul.msk.f32.gmra.mxu0 %vm1225_vm4, %v3382_v28  ;;  %2566 = vmatmul.msk.f32.gmra.mxu1 %vm1225_vm4, %v3382_v28 }
 0x11f   :  { %2571 = vmatmul.msk.f32.gmra.mxu2 %vm1225_vm4, %v3382_v28  ;;  %2576 = vmatmul.msk.f32.gmra.mxu3 %vm1225_vm4, %v3382_v28 }
 0x122   :  { %v3394_v27 = vpop.f32.mrf.mxu2  ;;  %v3396_v57 = vpop.f32.mrf.mxu3 }
 0x123   :  { %v3398_v40 = vpop.f32.mrf.mxu0  ;;  %v3400_v50 = vpop.f32.mrf.mxu1 }
 0x124   :  { %v736_v26 = vadd.f32 %v3398_v40, %v3086_v19  ;;  %v785_v19 = vadd.f32 %v3350_v22, %v3030_v3  ;;  %v791_v3 = vadd.f32 %v3394_v27, %v3082_v17 }
 0x126   :  { %2562 = vmatmul.msk.f32.gmra.mxu0 %vm1225_vm4, %v3405_v41  ;;  %2567 = vmatmul.msk.f32.gmra.mxu1 %vm1225_vm4, %v3405_v41 }
 0x127   :  { %2572 = vmatmul.msk.f32.gmra.mxu2 %vm1225_vm4, %v3405_v41  ;;  %2577 = vmatmul.msk.f32.gmra.mxu3 %vm1225_vm4, %v3405_v41 }
 0x12a   :  { %v3415_v52 = vpop.f32.mrf.mxu2  ;;  %v3417_v14 = vpop.f32.mrf.mxu3 }
 0x12b   :  { %v3419_v13 = vpop.f32.mrf.mxu0  ;;  %v3421_v51 = vpop.f32.mrf.mxu1 }
 0x12c   :  { %3961 = vst [vmem:[#allocation51_spill] sm:$0xff] %v3421_v51 }
 0x12e   :  { %2579 = vmatmul.msk.f32.vlgmr.msrb.gmra.mxu0 %vm1225_vm4, %v3335_v58  ;;  %2584 = vmatmul.msk.f32.vlgmr.msrb.gmra.mxu1 %vm1225_vm4, %v3335_v58 }
 0x12f   :  { %2589 = vmatmul.msk.f32.vlgmr.msrb.gmra.mxu2 %vm1225_vm4, %v3335_v58  ;;  %2594 = vmatmul.msk.f32.vlgmr.msrb.gmra.mxu3 %vm1225_vm4, %v3335_v58 }
 0x130   :  { %2628 = vmatpush.msk.msrb.mxu2 %vm1238_vm3, %v1223_v55  ;;  %2633 = vmatpush.msk.msrb.mxu3 %vm1238_vm3, %v1224_v56 }
 0x131   :  { %2623 = vmatpush.msk.msrb.mxu1 %vm1238_vm3, %v1222_v21  ;;  %2618 = vmatpush.msk.msrb.mxu0 %vm1238_vm3, %v1221_v2  ;;  %v1191_v2 = vld [vmem:[#allocation2 + $0x70] sm:$0xff] }
 0x132   :  { %v3433_v48 = vpop.f32.mrf.mxu2  ;;  %v3435_v47 = vpop.f32.mrf.mxu3  ;;  %1707 = vmatpush.msrb.mxu2 %v1207_v63  ;;  %1736 = vmatpush.msrb.mxu3 %v1208_v62 }
 0x133   :  { %3962 = vst [vmem:[#allocation52_spill] sm:$0xff] %v3433_v48  ;;  %v3437_v16 = vpop.f32.mrf.mxu0  ;;  %v3439_v15 = vpop.f32.mrf.mxu1 }
 0x134   :  { %3963 = vst [vmem:[#allocation53_spill] sm:$0xff] %v3435_v47  ;;  %1708 = vmatpush.msrb.mxu2 %v1191_v2  ;;  %1737 = vmatpush.msrb.mxu3 %v1192_v34 }
 0x135   :  { %3964 = vst [vmem:[#allocation54_spill] sm:$0xff] %v3439_v15 }
 0x136   :  { %2580 = vmatmul.msk.f32.gmra.mxu0 %vm1225_vm4, %v3361_v42  ;;  %2585 = vmatmul.msk.f32.gmra.mxu1 %vm1225_vm4, %v3361_v42 }
 0x137   :  { %2590 = vmatmul.msk.f32.gmra.mxu2 %vm1225_vm4, %v3361_v42  ;;  %2595 = vmatmul.msk.f32.gmra.mxu3 %vm1225_vm4, %v3361_v42 }
 0x13a   :  { %v3449_v55 = vpop.f32.mrf.mxu2  ;;  %v3451_v56 = vpop.f32.mrf.mxu3 }
 0x13b   :  { %3965 = vst [vmem:[#allocation55_spill] sm:$0xff] %v3449_v55  ;;  %v3453_v54 = vpop.f32.mrf.mxu0  ;;  %v3455_v53 = vpop.f32.mrf.mxu1  ;;  %v1189_v55 = vld [vmem:[#allocation2 + $0x60] sm:$0xff] }
 0x13c   :  { %3966 = vst [vmem:[#allocation56_spill] sm:$0xff] %v3451_v56 }
 0x13e   :  { %2581 = vmatmul.msk.f32.gmra.mxu0 %vm1225_vm4, %v3382_v28  ;;  %2586 = vmatmul.msk.f32.gmra.mxu1 %vm1225_vm4, %v3382_v28 }
 0x13f   :  { %2591 = vmatmul.msk.f32.gmra.mxu2 %vm1225_vm4, %v3382_v28  ;;  %2596 = vmatmul.msk.f32.gmra.mxu3 %vm1225_vm4, %v3382_v28 }
 0x142   :  { %v3467_v63 = vpop.f32.mrf.mxu2  ;;  %v3469_v62 = vpop.f32.mrf.mxu3 }
 0x143   :  { %3967 = vst [vmem:[#allocation57_spill] sm:$0xff] %v3467_v63  ;;  %v3471_v44 = vpop.f32.mrf.mxu0  ;;  %v3473_v21 = vpop.f32.mrf.mxu1  ;;  %v1205_v63 = vld [vmem:[#allocation2 + $0xe0] sm:$0xff] }
 0x144   :  { %3968 = vst [vmem:[#allocation58_spill] sm:$0xff] %v3469_v62  ;;  %v1206_v62 = vld [vmem:[#allocation2 + $0xe8] sm:$0xff]  ;;  %1649 = vmatpush.msrb.mxu0 %v1205_v63 }
 0x145   :  { %3969 = vst [vmem:[#allocation59_spill] sm:$0xff] %v3471_v44  ;;  %1678 = vmatpush.msrb.mxu1 %v1206_v62 }
 0x146   :  { %3970 = vst [vmem:[#allocation60_spill] sm:$0xff] %v3473_v21  ;;  %2582 = vmatmul.msk.f32.gmra.mxu0 %vm1225_vm4, %v3405_v41  ;;  %2587 = vmatmul.msk.f32.gmra.mxu1 %vm1225_vm4, %v3405_v41  ;;  %v765_v21 = vadd.f32 %v3400_v50, %v3088_v20  ;;  %v814_v20 = vadd.f32 %v3352_v12, %v3032_v4 }
 0x147   :  { %2592 = vmatmul.msk.f32.gmra.mxu2 %vm1225_vm4, %v3405_v41  ;;  %2597 = vmatmul.msk.f32.gmra.mxu3 %vm1225_vm4, %v3405_v41  ;;  %v820_v4 = vadd.f32 %v3396_v57, %v3084_v18 }
 0x148   :  { %1650 = vmatpush.msrb.mxu0 %v1189_v55  ;;  %1679 = vmatpush.msrb.mxu1 %v1190_v36 }
 0x14a   :  { %v3483_v56 = vpop.f32.mrf.mxu2  ;;  %v3485_v2 = vpop.f32.mrf.mxu3 }
 0x14b   :  { %3971 = vst [vmem:[#allocation61_spill] sm:$0xff] %v3483_v56  ;;  %v3487_v34 = vpop.f32.mrf.mxu0  ;;  %v3489_v37 = vpop.f32.mrf.mxu1 }
 0x14c   :  { %3972 = vst [vmem:[#allocation62_spill] sm:$0xff] %v3485_v2 }
 0x14d   :  { %3973 = vst [vmem:[#allocation63_spill] sm:$0xff] %v3487_v34 }
 0x14e   :  { %3974 = vst [vmem:[#allocation64_spill] sm:$0xff] %v3489_v37  ;;  %2599 = vmatmul.msk.f32.vlgmr.msra.gmra.mxu0 %vm1225_vm4, %v3335_v58  ;;  %2604 = vmatmul.msk.f32.vlgmr.msra.gmra.mxu1 %vm1225_vm4, %v3335_v58 }
 0x14f   :  { %2609 = vmatmul.msk.f32.vlgmr.msra.gmra.mxu2 %vm1225_vm4, %v3335_v58  ;;  %2614 = vmatmul.msk.f32.vlgmr.msra.gmra.mxu3 %vm1225_vm4, %v3335_v58 }
 0x152   :  { %v3499_v63 = vpop.f32.mrf.mxu2  ;;  %v3501_v62 = vpop.f32.mrf.mxu3 }
 0x153   :  { %3975 = vst [vmem:[#allocation65_spill] sm:$0xff] %v3499_v63  ;;  %v3503_v37 = vpop.f32.mrf.mxu0  ;;  %v3505_v55 = vpop.f32.mrf.mxu1 }
 0x154   :  { %3976 = vst [vmem:[#allocation66_spill] sm:$0xff] %v3501_v62 }
 0x155   :  { %3977 = vst [vmem:[#allocation67_spill] sm:$0xff] %v3503_v37 }
 0x156   :  { %3978 = vst [vmem:[#allocation68_spill] sm:$0xff] %v3505_v55  ;;  %2600 = vmatmul.msk.f32.gmra.mxu0 %vm1225_vm4, %v3361_v42  ;;  %2605 = vmatmul.msk.f32.gmra.mxu1 %vm1225_vm4, %v3361_v42 }
 0x157   :  { %2610 = vmatmul.msk.f32.gmra.mxu2 %vm1225_vm4, %v3361_v42  ;;  %2615 = vmatmul.msk.f32.gmra.mxu3 %vm1225_vm4, %v3361_v42 }
 0x15a   :  { %v3515_v36 = vpop.f32.mrf.mxu2  ;;  %v3517_v63 = vpop.f32.mrf.mxu3 }
 0x15b   :  { %3979 = vst [vmem:[#allocation69_spill] sm:$0xff] %v3515_v36  ;;  %v3519_v62 = vpop.f32.mrf.mxu0  ;;  %v3521_v34 = vpop.f32.mrf.mxu1 }
 0x15c   :  { %3980 = vst [vmem:[#allocation70_spill] sm:$0xff] %v3517_v63 }
 0x15d   :  { %3981 = vst [vmem:[#allocation71_spill] sm:$0xff] %v3519_v62 }
 0x15e   :  { %3982 = vst [vmem:[#allocation72_spill] sm:$0xff] %v3521_v34  ;;  %2601 = vmatmul.msk.f32.gmra.mxu0 %vm1225_vm4, %v3382_v28  ;;  %2606 = vmatmul.msk.f32.gmra.mxu1 %vm1225_vm4, %v3382_v28 }
 0x15f   :  { %2611 = vmatmul.msk.f32.gmra.mxu2 %vm1225_vm4, %v3382_v28  ;;  %2616 = vmatmul.msk.f32.gmra.mxu3 %vm1225_vm4, %v3382_v28 }
 0x162   :  { %v3531_v55 = vpop.f32.mrf.mxu2  ;;  %v3533_v36 = vpop.f32.mrf.mxu3 }
 0x163   :  { %3983 = vst [vmem:[#allocation73_spill] sm:$0xff] %v3531_v55  ;;  %v3535_v63 = vpop.f32.mrf.mxu0  ;;  %v3537_v37 = vpop.f32.mrf.mxu1 }
 0x164   :  { %3984 = vst [vmem:[#allocation74_spill] sm:$0xff] %v3533_v36  ;;  %v3621_v48 = vpop.permute.xlu1 %1826 }
 0x165   :  { %3985 = vst [vmem:[#allocation75_spill] sm:$0xff] %v3535_v63 }
 0x166   :  { %3986 = vst [vmem:[#allocation76_spill] sm:$0xff] %v3537_v37  ;;  %2602 = vmatmul.msk.f32.gmra.mxu0 %vm1225_vm4, %v3405_v41  ;;  %2607 = vmatmul.msk.f32.gmra.mxu1 %vm1225_vm4, %v3405_v41 }
 0x167   :  { %2612 = vmatmul.msk.f32.gmra.mxu2 %vm1225_vm4, %v3405_v41  ;;  %2617 = vmatmul.msk.f32.gmra.mxu3 %vm1225_vm4, %v3405_v41 }
 0x16a   :  { %v3547_v34 = vpop.f32.mrf.mxu2  ;;  %v3549_v55 = vpop.f32.mrf.mxu3 }
 0x16b   :  { %3987 = vst [vmem:[#allocation77_spill] sm:$0xff] %v3547_v34  ;;  %v3551_v36 = vpop.f32.mrf.mxu0  ;;  %v3553_v63 = vpop.f32.mrf.mxu1 }
 0x16c   :  { %3988 = vst [vmem:[#allocation78_spill] sm:$0xff] %v3549_v55 }
 0x16d   :  { %3989 = vst [vmem:[#allocation79_spill] sm:$0xff] %v3551_v36 }
 0x16e   :  { %3990 = vst [vmem:[#allocation80_spill] sm:$0xff] %v3553_v63  ;;  %2619 = vmatmul.msk.f32.vlgmr.msrb.gmra.mxu0 %vm1225_vm4, %v3335_v58  ;;  %2624 = vmatmul.msk.f32.vlgmr.msrb.gmra.mxu1 %vm1225_vm4, %v3335_v58 }
 0x16f   :  { %2629 = vmatmul.msk.f32.vlgmr.msrb.gmra.mxu2 %vm1225_vm4, %v3335_v58  ;;  %2634 = vmatmul.msk.f32.vlgmr.msrb.gmra.mxu3 %vm1225_vm4, %v3335_v58  ;;  %v3619_v62 = vpop.permute.xlu0 %1836 }
 0x172   :  { %v3563_v37 = vpop.f32.mrf.mxu2  ;;  %v3565_v34 = vpop.f32.mrf.mxu3 }
 0x173   :  { %3991 = vst [vmem:[#allocation81_spill] sm:$0xff] %v3563_v37  ;;  %v3567_v55 = vpop.f32.mrf.mxu0  ;;  %v3569_v36 = vpop.f32.mrf.mxu1 }
 0x174   :  { %3992 = vst [vmem:[#allocation82_spill] sm:$0xff] %v3565_v34 }
 0x175   :  { %3993 = vst [vmem:[#allocation83_spill] sm:$0xff] %v3567_v55 }
 0x176   :  { %3994 = vst [vmem:[#allocation84_spill] sm:$0xff] %v3569_v36  ;;  %2620 = vmatmul.msk.f32.gmra.mxu0 %vm1225_vm4, %v3361_v42  ;;  %2625 = vmatmul.msk.f32.gmra.mxu1 %vm1225_vm4, %v3361_v42 }
 0x177   :  { %2630 = vmatmul.msk.f32.gmra.mxu2 %vm1225_vm4, %v3361_v42  ;;  %2635 = vmatmul.msk.f32.gmra.mxu3 %vm1225_vm4, %v3361_v42 }
 0x17a   :  { %v3579_v58 = vpop.f32.mrf.mxu2  ;;  %v3581_v37 = vpop.f32.mrf.mxu3 }
 0x17b   :  { %3995 = vst [vmem:[#allocation85_spill] sm:$0xff] %v3579_v58  ;;  %v3583_v34 = vpop.f32.mrf.mxu0  ;;  %v3585_v63 = vpop.f32.mrf.mxu1 }
 0x17c   :  { %3996 = vst [vmem:[#allocation86_spill] sm:$0xff] %v3581_v37  ;;  %v3631_v51 = vpop.permute.xlu0 %1831 }
 0x17d   :  { %3997 = vst [vmem:[#allocation87_spill] sm:$0xff] %v3583_v34 }
 0x17e   :  { %3998 = vst [vmem:[#allocation88_spill] sm:$0xff] %v3585_v63  ;;  %2621 = vmatmul.msk.f32.gmra.mxu0 %vm1225_vm4, %v3382_v28  ;;  %2626 = vmatmul.msk.f32.gmra.mxu1 %vm1225_vm4, %v3382_v28 }
 0x17f   :  { %2631 = vmatmul.msk.f32.gmra.mxu2 %vm1225_vm4, %v3382_v28  ;;  %2636 = vmatmul.msk.f32.gmra.mxu3 %vm1225_vm4, %v3382_v28 }
 0x182   :  { %v3595_v42 = vpop.f32.mrf.mxu2  ;;  %v3597_v58 = vpop.f32.mrf.mxu3 }
 0x183   :  { %3999 = vst [vmem:[#allocation89_spill] sm:$0xff] %v3595_v42  ;;  %v3599_v37 = vpop.f32.mrf.mxu0  ;;  %v3601_v36 = vpop.f32.mrf.mxu1 }
 0x184   :  { %4000 = vst [vmem:[#allocation90_spill] sm:$0xff] %v3597_v58 }
 0x185   :  { %4001 = vst [vmem:[#allocation91_spill] sm:$0xff] %v3599_v37 }
 0x186   :  { %4002 = vst [vmem:[#allocation92_spill] sm:$0xff] %v3601_v36  ;;  %2622 = vmatmul.msk.f32.gmra.mxu0 %vm1225_vm4, %v3405_v41  ;;  %2627 = vmatmul.msk.f32.gmra.mxu1 %vm1225_vm4, %v3405_v41 }
 0x187   :  { %2632 = vmatmul.msk.f32.gmra.mxu2 %vm1225_vm4, %v3405_v41  ;;  %2637 = vmatmul.msk.f32.gmra.mxu3 %vm1225_vm4, %v3405_v41  ;;  %v733_v41 = vadd.f32 %v3375_v61, %v3059_v10 }
 0x18a   :  { %v3611_v28 = vpop.f32.mrf.mxu2  ;;  %v3613_v42 = vpop.f32.mrf.mxu3 }
 0x18b   :  { %4003 = vst [vmem:[#allocation93_spill] sm:$0xff] %v3611_v28  ;;  %v1304_v58 = vpop.f32.mrf.mxu0  ;;  %v1333_v37 = vpop.f32.mrf.mxu1  ;;  %v730_v28 = vadd.f32 %v3354_v7, %v3034_v5  ;;  %v756_v5 = vadd.f32 %v3330_v29, %v3013_v60 }
 0x18c   :  { %4004 = vst [vmem:[#allocation94_spill] sm:$0xff] %v3613_v42  ;;  %v762_v42 = vadd.f32 %v3377_v1, %v3061_v11  ;;  %v727_v11 = vadd.f32 %v3328_v0, %v3011_v59 }
 0x18d   :  { %v1752_v40 = vadd.f32 %v1333_v37, %v756_v5  ;;  %v3657_v37 = vpop.permute.xlu1 %1821 }
 0x18f   :  { %v1840_v27 = vadd.f32 %v3657_v37, %v1752_v40 }
 0x192   :  { %v3615_v55 = vpop.f32.mrf.mxu2  ;;  %v3617_v36 = vpop.f32.mrf.mxu3 }
 0x193   :  { %v1307_v63 = vpop.f32.mrf.mxu0  ;;  %v1336_v34 = vpop.f32.mrf.mxu1 }
 0x194   :  { %v1767_v43 = vadd.f32 %v1307_v63, %v730_v28  ;;  %v1768_v7 = vadd.f32 %v1336_v34, %v759_v31  ;;  %v817_v31 = vadd.f32 %v3373_v30, %v3057_v9  ;;  %v823_v9 = vadd.f32 %v3417_v14, %v3105_v24 }
 0x195   :  { %v1753_v24 = vadd.f32 %v3615_v55, %v785_v19  ;;  %v1754_v14 = vadd.f32 %v3617_v36, %v814_v20 }
 0x197   :  { %v1841_v5 = vadd.f32 %v3657_v37, %v1753_v24  ;;  %v4016_v24 = vld [vmem:[#allocation11_spill] sm:$0xff] }
 0x19a   :  { %v1365_v2 = vpop.f32.mrf.mxu2  ;;  %v1394_v56 = vpop.f32.mrf.mxu3 }
 0x19b   :  { %v1310_v47 = vpop.f32.mrf.mxu0  ;;  %v1339_v32 = vpop.f32.mrf.mxu1 }
 0x19c   :  { %v1783_v46 = vadd.f32 %v1310_v47, %v733_v41  ;;  %v1784_v44 = vadd.f32 %v1339_v32, %v762_v42  ;;  %v1751_v32 = vadd.f32 %v1304_v58, %v727_v11  ;;  %v1770_v47 = vadd.f32 %v1394_v56, %v817_v31 }
 0x19e   :  { %v1871_v60 = vadd.f32 %v3631_v51, %v1783_v46  ;;  %v1872_v29 = vadd.f32 %v3631_v51, %v1784_v44  ;;  %v1856_v46 = vadd.f32 %v3621_v48, %v1768_v7  ;;  %v1839_v30 = vadd.f32 %v3657_v37, %v1751_v32 }
 0x19f   :  { %v1858_v36 = vadd.f32 %v3621_v48, %v1770_v47 }
 0x1a0   :  { %v1935_v18 = vmax.f32 %v1871_v60, 0.0  ;;  %v1920_v58 = vmax.f32 %v1856_v46, 0.0  ;;  %v1903_v41 = vmax.f32 %v1839_v30, 0.0  ;;  %v843_v46 = vadd.f32 %v3419_v13, %v3107_v25  ;;  %v4012_v25 = vld [vmem:[#allocation9_spill] sm:$0xff]  ;;  %v4013_v13 = vld [vmem:[#allocation52_spill] sm:$0xff] }
 0x1a1   :  { %v1922_v32 = vmax.f32 %v1858_v36, 0.0 }
 0x1a2   :  { %v1368_v10 = vpop.f32.mrf.mxu2  ;;  %v1397_v61 = vpop.f32.mrf.mxu3 }
 0x1a3   :  { %v1313_v1 = vpop.f32.mrf.mxu0  ;;  %v1342_v6 = vpop.f32.mrf.mxu1  ;;  %v1785_v0 = vadd.f32 %v1368_v10, %v791_v3  ;;  %v1786_v22 = vadd.f32 %v1397_v61, %v820_v4  ;;  %v1904_v10 = vmax.f32 %v1840_v27, 0.0  ;;  %v849_v4 = vadd.f32 %v3453_v54, %v3145_v38 }
 0x1a4   :  { %v1799_v45 = vadd.f32 %v1313_v1, %v736_v26  ;;  %v1800_v15 = vadd.f32 %v1342_v6, %v765_v21  ;;  %v788_v26 = vadd.f32 %v3371_v49, %v3055_v8  ;;  %v794_v8 = vadd.f32 %v3415_v52, %v3103_v23 }
 0x1a5   :  { %v1936_v49 = vmax.f32 %v1872_v29, 0.0  ;;  %v1873_v42 = vadd.f32 %v3631_v51, %v1785_v0  ;;  %v1874_v28 = vadd.f32 %v3631_v51, %v1786_v22  ;;  %v1842_v1 = vadd.f32 %v3657_v37, %v1754_v14  ;;  %v4007_v0 = vld [vmem:[#allocation59_spill] sm:$0xff] }
 0x1a6   :  { %v1887_v50 = vadd.f32 %v3619_v62, %v1799_v45  ;;  %v1888_v59 = vadd.f32 %v3619_v62, %v1800_v15  ;;  %v1855_v45 = vadd.f32 %v3621_v48, %v1767_v43  ;;  %v1769_v57 = vadd.f32 %v1365_v2, %v788_v26  ;;  %v4017_v14 = vld [vmem:[#allocation55_spill] sm:$0xff] }
 0x1a7   :  { %v1937_v6 = vmax.f32 %v1873_v42, 0.0  ;;  %v1938_v43 = vmax.f32 %v1874_v28, 0.0  ;;  %v1906_v60 = vmax.f32 %v1842_v1, 0.0 }
 0x1a8   :  { %v1951_v15 = vmax.f32 %v1887_v50, 0.0  ;;  %v1952_v44 = vmax.f32 %v1888_v59, 0.0  ;;  %v1919_v63 = vmax.f32 %v1855_v45, 0.0  ;;  %v1857_v55 = vadd.f32 %v3621_v48, %v1769_v57 }
 0x1a9   :  { %v1905_v59 = vmax.f32 %v1841_v5, 0.0  ;;  %v878_v45 = vadd.f32 %v3455_v53, %v3147_v39  ;;  %v4010_v39 = vld [vmem:[#allocation8_spill] sm:$0xff]  ;;  %v4011_v53 = vld [vmem:[#allocation51_spill] sm:$0xff]  ;;  %v901_v57 = vadd.f32 %v4013_v13, %v4012_v25 }
 0x1aa   :  { %v1371_v17 = vpop.f32.mrf.mxu2  ;;  %v1400_v12 = vpop.f32.mrf.mxu3  ;;  %1990 = vmatpush.msra.mxu0 %v1951_v15  ;;  %2010 = vmatpush.msra.mxu1 %v1952_v44  ;;  %v1921_v20 = vmax.f32 %v1857_v55, 0.0  ;;  %v846_v15 = vadd.f32 %v3437_v16, %v3125_v33  ;;  %v4005_v44 = vld [vmem:[#allocation54_spill] sm:$0xff]  ;;  %v872_v27 = vadd.f32 %v4011_v53, %v4010_v39  ;;  %v4015_v16 = vld [vmem:[#allocation53_spill] sm:$0xff] }
 0x1ab   :  { %v1801_v21 = vadd.f32 %v1371_v17, %v794_v8  ;;  %v1802_v34 = vadd.f32 %v1400_v12, %v823_v9  ;;  %v3667_v23 = vpop.f32.mrf.mxu0  ;;  %v3669_v52 = vpop.f32.mrf.mxu1  ;;  %v875_v8 = vadd.f32 %v4005_v44, %v3127_v35  ;;  %v4006_v9 = vld [vmem:[#allocation15_spill] sm:$0xff]  ;;  %v4008_v17 = vld [vmem:[#allocation16_spill] sm:$0xff]  ;;  %v4014_v33 = vld [vmem:[#allocation10_spill] sm:$0xff] }
 0x1ac   :  { %1991 = vmatpush.msra.mxu0 %v1935_v18  ;;  %2011 = vmatpush.msra.mxu1 %v1936_v49  ;;  %v852_v22 = vadd.f32 %v4007_v0, %v4006_v9  ;;  %v4009_v12 = vld [vmem:[#allocation60_spill] sm:$0xff]  ;;  %v930_v47 = vadd.f32 %v4015_v16, %v4014_v33  ;;  %v4021_v55 = vld [vmem:[#allocation57_spill] sm:$0xff] }
 0x1ad   :  { %v1889_v56 = vadd.f32 %v3619_v62, %v1801_v21  ;;  %v1890_v2 = vadd.f32 %v3619_v62, %v1802_v34  ;;  %v881_v18 = vadd.f32 %v4009_v12, %v4008_v17 }
 0x1ae   :  { %1992 = vmatpush.msra.mxu0 %v1919_v63  ;;  %2012 = vmatpush.msra.mxu1 %v1920_v58  ;;  %v904_v63 = vadd.f32 %v4017_v14, %v4016_v24 }
 0x1af   :  { %v1953_v61 = vmax.f32 %v1889_v56, 0.0  ;;  %v1954_v11 = vmax.f32 %v1890_v2, 0.0  ;;  %v4018_v56 = vld [vmem:[#allocation12_spill] sm:$0xff] }
 0x1b0   :  { %1993 = vmatpush.msra.mxu0 %v1903_v41  ;;  %2013 = vmatpush.msra.mxu1 %v1904_v10  ;;  %v4019_v2 = vld [vmem:[#allocation56_spill] sm:$0xff]  ;;  %v4020_v10 = vld [vmem:[#allocation13_spill] sm:$0xff] }
 0x1b1   :  { %2030 = vmatpush.msra.mxu2 %v1953_v61  ;;  %2050 = vmatpush.msra.mxu3 %v1954_v11  ;;  %v933_v41 = vadd.f32 %v4019_v2, %v4018_v56  ;;  %v907_v36 = vadd.f32 %v4021_v55, %v4020_v10  ;;  %v1755_v61 = vadd.f32 %v3667_v23, %v843_v46 }
 0x1b2   :  { %v1478_v7 = vpop.f32.mrf.mxu2  ;;  %v3681_v19 = vpop.f32.mrf.mxu3  ;;  %v1756_v11 = vadd.f32 %v3669_v52, %v872_v27 }
 0x1b3   :  { %2031 = vmatpush.msra.mxu2 %v1937_v6  ;;  %2051 = vmatpush.msra.mxu3 %v1938_v43  ;;  %v1423_v40 = vpop.f32.mrf.mxu0  ;;  %v1452_v50 = vpop.f32.mrf.mxu1  ;;  %v1843_v44 = vadd.f32 %v3657_v37, %v1755_v61  ;;  %v1757_v9 = vadd.f32 %v1478_v7, %v901_v57 }
 0x1b4   :  { %v1771_v35 = vadd.f32 %v1423_v40, %v846_v15  ;;  %v1772_v58 = vadd.f32 %v1452_v50, %v875_v8  ;;  %v4024_v50 = vld [vmem:[#allocation17_spill] sm:$0xff]  ;;  %v1844_v8 = vadd.f32 %v3657_v37, %v1756_v11 }
 0x1b5   :  { %2032 = vmatpush.msra.mxu2 %v1921_v20  ;;  %2052 = vmatpush.msra.mxu3 %v1922_v32  ;;  %v4022_v20 = vld [vmem:[#allocation14_spill] sm:$0xff]  ;;  %v1907_v16 = vmax.f32 %v1843_v44, 0.0  ;;  %v1845_v24 = vadd.f32 %v3657_v37, %v1757_v9  ;;  %v4039_v44 = vld [vmem:[#allocation76_spill] sm:$0xff] }
 0x1b6   :  { %v4023_v32 = vld [vmem:[#allocation58_spill] sm:$0xff]  ;;  %v1859_v23 = vadd.f32 %v3621_v48, %v1771_v35  ;;  %v1860_v52 = vadd.f32 %v3621_v48, %v1772_v58 }
 0x1b7   :  { %2033 = vmatpush.msra.mxu2 %v1905_v59  ;;  %2053 = vmatpush.msra.mxu3 %v1906_v60  ;;  %v936_v40 = vadd.f32 %v4023_v32, %v4022_v20  ;;  %v4025_v59 = vld [vmem:[#allocation61_spill] sm:$0xff]  ;;  %v1909_v55 = vmax.f32 %v1845_v24, 0.0  ;;  %v4030_v32 = vld [vmem:[#allocation28_spill] sm:$0xff] }
 0x1b8   :  { %v910_v60 = vadd.f32 %v4025_v59, %v4024_v50  ;;  %v1924_v25 = vmax.f32 %v1860_v52, 0.0  ;;  %v4032_v59 = vld [vmem:[#allocation23_spill] sm:$0xff] }
 0x1b9   :  { %v4036_v52 = vld [vmem:[#allocation31_spill] sm:$0xff] }
 0x1ba   :  { %v1481_v29 = vpop.f32.mrf.mxu2  ;;  %v1510_v26 = vpop.f32.mrf.mxu3 }
 0x1bb   :  { %v1426_v31 = vpop.f32.mrf.mxu0  ;;  %v1455_v3 = vpop.f32.mrf.mxu1 }
 0x1bc   :  { %v1787_v49 = vadd.f32 %v1426_v31, %v849_v4  ;;  %v1788_v38 = vadd.f32 %v1455_v3, %v878_v45  ;;  %v4026_v31 = vld [vmem:[#allocation18_spill] sm:$0xff] }
 0x1bd   :  { %v4027_v3 = vld [vmem:[#allocation62_spill] sm:$0xff] }
 0x1be   :  { %v1875_v5 = vadd.f32 %v3631_v51, %v1787_v49  ;;  %v1876_v1 = vadd.f32 %v3631_v51, %v1788_v38  ;;  %v939_v4 = vadd.f32 %v4027_v3, %v4026_v31  ;;  %v3728_v38 = vld [vmem:[%s3915_s6] sm:$0x3] }
 0x1bf   :  { %2638 = vmatmul.msk.f32.vlgmr.msra.gmra.mxu0 %vm1974_vm0, %v3728_v38  ;;  %2639 = vmatmul.msk.f32.vlgmr.msra.gmra.mxu1 %vm1974_vm0, %v3728_v38  ;;  %v4034_v3 = vld [vmem:[#allocation24_spill] sm:$0xff] }
 0x1c0   :  { %v1939_v17 = vmax.f32 %v1875_v5, 0.0  ;;  %v1940_v12 = vmax.f32 %v1876_v1, 0.0  ;;  %2640 = vmatmul.msk.f32.vlgmr.msra.gmra.mxu2 %vm1974_vm0, %v3728_v38  ;;  %2641 = vmatmul.msk.f32.vlgmr.msra.gmra.mxu3 %vm1974_vm0, %v3728_v38 }
 0x1c2   :  { %v1484_v54 = vpop.f32.mrf.mxu2  ;;  %v1513_v30 = vpop.f32.mrf.mxu3 }
 0x1c3   :  { %v1429_v21 = vpop.f32.mrf.mxu0  ;;  %v1458_v34 = vpop.f32.mrf.mxu1  ;;  %v1789_v45 = vadd.f32 %v1484_v54, %v907_v36  ;;  %v1790_v0 = vadd.f32 %v1513_v30, %v936_v40  ;;  %v1774_v54 = vadd.f32 %v1510_v26, %v933_v41  ;;  %v1923_v30 = vmax.f32 %v1859_v23, 0.0  ;;  %v4031_v40 = vld [vmem:[#allocation72_spill] sm:$0xff] }
 0x1c4   :  { %v1803_v42 = vadd.f32 %v1429_v21, %v852_v22  ;;  %v1804_v28 = vadd.f32 %v1458_v34, %v881_v18  ;;  %v1773_v22 = vadd.f32 %v1481_v29, %v904_v63  ;;  %v1758_v29 = vadd.f32 %v3681_v19, %v930_v47 }
 0x1c5   :  { %v1877_v13 = vadd.f32 %v3631_v51, %v1789_v45  ;;  %v1878_v26 = vadd.f32 %v3631_v51, %v1790_v0  ;;  %v1908_v19 = vmax.f32 %v1844_v8, 0.0  ;;  %v1862_v35 = vadd.f32 %v3621_v48, %v1774_v54  ;;  %v4037_v45 = vld [vmem:[#allocation75_spill] sm:$0xff]  ;;  %v4042_v54 = vld [vmem:[#allocation20_spill] sm:$0xff] }
 0x1c6   :  { %v1891_v6 = vadd.f32 %v3619_v62, %v1803_v42  ;;  %v1892_v43 = vadd.f32 %v3619_v62, %v1804_v28  ;;  %v1861_v47 = vadd.f32 %v3621_v48, %v1773_v22  ;;  %v1846_v14 = vadd.f32 %v3657_v37, %v1758_v29 }
 0x1c7   :  { %v1941_v63 = vmax.f32 %v1877_v13, 0.0  ;;  %v1942_v58 = vmax.f32 %v1878_v26, 0.0  ;;  %v1926_v2 = vmax.f32 %v1862_v35, 0.0  ;;  %v994_v50 = vadd.f32 %v4031_v40, %v4030_v32  ;;  %v4047_v35 = vld [vmem:[#allocation66_spill] sm:$0xff] }
 0x1c8   :  { %v1955_v46 = vmax.f32 %v1891_v6, 0.0  ;;  %v1956_v15 = vmax.f32 %v1892_v43, 0.0  ;;  %v1925_v56 = vmax.f32 %v1861_v47, 0.0  ;;  %v1910_v36 = vmax.f32 %v1846_v14, 0.0  ;;  %v4028_v6 = vld [vmem:[#allocation27_spill] sm:$0xff]  ;;  %v4046_v47 = vld [vmem:[#allocation22_spill] sm:$0xff] }
 0x1c9   :  { %v4029_v43 = vld [vmem:[#allocation71_spill] sm:$0xff] }
 0x1ca   :  { %v1487_v18 = vpop.f32.mrf.mxu2  ;;  %v1516_v49 = vpop.f32.mrf.mxu3  ;;  %2070 = vmatpush.msrb.mxu0 %v1955_v46  ;;  %2090 = vmatpush.msrb.mxu1 %v1956_v15  ;;  %v965_v20 = vadd.f32 %v4029_v43, %v4028_v6  ;;  %v968_v46 = vadd.f32 %v4037_v45, %v4036_v52  ;;  %v4038_v15 = vld [vmem:[#allocation32_spill] sm:$0xff]  ;;  %v4053_v6 = vld [vmem:[#allocation73_spill] sm:$0xff] }
 0x1cb   :  { %v1805_v39 = vadd.f32 %v1487_v18, %v910_v60  ;;  %v1806_v53 = vadd.f32 %v1516_v49, %v939_v4  ;;  %v3730_v27 = vpop.f32.mrf.mxu0  ;;  %v3732_v7 = vpop.f32.mrf.mxu1  ;;  %v4033_v60 = vld [vmem:[#allocation67_spill] sm:$0xff]  ;;  %v4035_v4 = vld [vmem:[#allocation68_spill] sm:$0xff]  ;;  %v997_v8 = vadd.f32 %v4039_v44, %v4038_v15 }
 0x1cc   :  { %2071 = vmatpush.msrb.mxu0 %v1939_v17  ;;  %2091 = vmatpush.msrb.mxu1 %v1940_v12  ;;  %v962_v31 = vadd.f32 %v4033_v60, %v4032_v59  ;;  %v991_v23 = vadd.f32 %v4035_v4, %v4034_v3  ;;  %v4040_v12 = vld [vmem:[#allocation19_spill] sm:$0xff]  ;;  %v4056_v60 = vld [vmem:[#allocation33_spill] sm:$0xff]  ;;  %v4058_v4 = vld [vmem:[#allocation34_spill] sm:$0xff] }
 0x1cd   :  { %v1893_v57 = vadd.f32 %v3619_v62, %v1805_v39  ;;  %v1894_v33 = vadd.f32 %v3619_v62, %v1806_v53  ;;  %v4041_v18 = vld [vmem:[#allocation63_spill] sm:$0xff]  ;;  %v4043_v39 = vld [vmem:[#allocation64_spill] sm:$0xff] }
 0x1ce   :  { %2072 = vmatpush.msrb.mxu0 %v1923_v30  ;;  %2092 = vmatpush.msrb.mxu1 %v1924_v25  ;;  %v959_v49 = vadd.f32 %v4041_v18, %v4040_v12  ;;  %v988_v53 = vadd.f32 %v4043_v39, %v4042_v54 }
 0x1cf   :  { %v1957_v21 = vmax.f32 %v1893_v57, 0.0  ;;  %v1958_v34 = vmax.f32 %v1894_v33, 0.0  ;;  %v4044_v33 = vld [vmem:[#allocation21_spill] sm:$0xff] }
 0x1d0   :  { %2073 = vmatpush.msrb.mxu0 %v1907_v16  ;;  %2093 = vmatpush.msrb.mxu1 %v1908_v19  ;;  %v4045_v16 = vld [vmem:[#allocation65_spill] sm:$0xff]  ;;  %v1760_v24 = vadd.f32 %v3732_v7, %v988_v53 }
 0x1d1   :  { %2110 = vmatpush.msrb.mxu2 %v1957_v21  ;;  %2130 = vmatpush.msrb.mxu3 %v1958_v34  ;;  %v1017_v19 = vadd.f32 %v4045_v16, %v4044_v33  ;;  %v1046_v21 = vadd.f32 %v4047_v35, %v4046_v47  ;;  %v1759_v34 = vadd.f32 %v3730_v27, %v959_v49  ;;  %v4054_v27 = vld [vmem:[#allocation30_spill] sm:$0xff] }
 0x1d2   :  { %v3751_v42 = vpop.f32.mrf.mxu2  ;;  %v3753_v28 = vpop.f32.mrf.mxu3  ;;  %2642 = vmatmul.msk.f32.vlgmr.msrb.gmra.mxu0 %vm1974_vm0, %v3728_v38  ;;  %2643 = vmatmul.msk.f32.vlgmr.msrb.gmra.mxu1 %vm1974_vm0, %v3728_v38  ;;  %v1848_v44 = vadd.f32 %v3657_v37, %v1760_v24 }
 0x1d3   :  { %2111 = vmatpush.msrb.mxu2 %v1941_v63  ;;  %2131 = vmatpush.msrb.mxu3 %v1942_v58  ;;  %v1539_v41 = vpop.f32.mrf.mxu0  ;;  %v1568_v10 = vpop.f32.mrf.mxu1  ;;  %v1847_v15 = vadd.f32 %v3657_v37, %v1759_v34 }
 0x1d4   :  { %v1775_v25 = vadd.f32 %v1539_v41, %v962_v31  ;;  %v1776_v13 = vadd.f32 %v1568_v10, %v991_v23  ;;  %v4049_v41 = vld [vmem:[#allocation69_spill] sm:$0xff]  ;;  %v4059_v23 = vld [vmem:[#allocation78_spill] sm:$0xff]  ;;  %v1912_v33 = vmax.f32 %v1848_v44, 0.0 }
 0x1d5   :  { %2112 = vmatpush.msrb.mxu2 %v1925_v56  ;;  %2132 = vmatpush.msrb.mxu3 %v1926_v2  ;;  %v4048_v2 = vld [vmem:[#allocation25_spill] sm:$0xff]  ;;  %v1055_v52 = vadd.f32 %v4059_v23, %v4058_v4  ;;  %v4068_v23 = vld [vmem:[#allocation47_spill] sm:$0xff] }
 0x1d6   :  { %v1020_v10 = vadd.f32 %v4049_v41, %v4048_v2  ;;  %v1863_v32 = vadd.f32 %v3621_v48, %v1775_v25  ;;  %v1864_v40 = vadd.f32 %v3621_v48, %v1776_v13  ;;  %v4057_v31 = vld [vmem:[#allocation77_spill] sm:$0xff] }
 0x1d7   :  { %2113 = vmatpush.msrb.mxu2 %v1909_v55  ;;  %2133 = vmatpush.msrb.mxu3 %v1910_v36  ;;  %v4050_v55 = vld [vmem:[#allocation26_spill] sm:$0xff]  ;;  %v1026_v3 = vadd.f32 %v4057_v31, %v4056_v60  ;;  %v4066_v31 = vld [vmem:[#allocation40_spill] sm:$0xff] }
 0x1d8   :  { %2644 = vmatmul.msk.f32.vlgmr.msrb.gmra.mxu2 %vm1974_vm0, %v3728_v38  ;;  %2645 = vmatmul.msk.f32.vlgmr.msrb.gmra.mxu3 %vm1974_vm0, %v3728_v38  ;;  %v4051_v36 = vld [vmem:[#allocation70_spill] sm:$0xff]  ;;  %v1928_v25 = vmax.f32 %v1864_v40, 0.0 }
 0x1da   :  { %v1597_v61 = vpop.f32.mrf.mxu2  ;;  %v1626_v11 = vpop.f32.mrf.mxu3 }
 0x1db   :  { %v1542_v5 = vpop.f32.mrf.mxu0  ;;  %v1571_v1 = vpop.f32.mrf.mxu1  ;;  %v1777_v18 = vadd.f32 %v1597_v61, %v1020_v10 }
 0x1dc   :  { %v1791_v9 = vadd.f32 %v1542_v5, %v965_v20  ;;  %v1792_v0 = vadd.f32 %v1571_v1, %v994_v50  ;;  %v1049_v5 = vadd.f32 %v4051_v36, %v4050_v55  ;;  %v4052_v1 = vld [vmem:[#allocation29_spill] sm:$0xff]  ;;  %v4055_v20 = vld [vmem:[#allocation74_spill] sm:$0xff]  ;;  %v1968_v55 = vld [vmem:[%s3916_s7] sm:$0x3]  ;;  %s2720_s7 = smov [#allocation5]  }
 0x1dd   :  { %v1023_v43 = vadd.f32 %v4053_v6, %v4052_v1  ;;  %v1052_v7 = vadd.f32 %v4055_v20, %v4054_v27  ;;  %1971 = vperm.xlu2 %2662, %v1968_v55   ;;  %v4061_v27 = vld [vmem:[#allocation87_spill] sm:$0xff]  ;;  %v4083_v55 = vld [vmem:[#allocation86_spill] sm:$0xff]  ;;  %s2354_s25 = sshll.u32 %s2720_s7, 4  ;;  %s2355_s25 = int_to_ptr.vmem [resolvable:$true] %s2354_s25 }
 0x1de   :  { %v1879_v14 = vadd.f32 %v3631_v51, %v1791_v9  ;;  %v1880_v63 = vadd.f32 %v3631_v51, %v1792_v0  ;;  %v1778_v49 = vadd.f32 %v1626_v11, %v1049_v5 }
 0x1e0   :  { %v1944_v9 = vmax.f32 %v1880_v63, 0.0 }
 0x1e2   :  { %v1600_v22 = vpop.f32.mrf.mxu2  ;;  %v1629_v17 = vpop.f32.mrf.mxu3 }
 0x1e3   :  { %v1545_v29 = vpop.f32.mrf.mxu0  ;;  %v1574_v30 = vpop.f32.mrf.mxu1  ;;  %v1793_v45 = vadd.f32 %v1600_v22, %v1023_v43  ;;  %v1761_v22 = vadd.f32 %v3751_v42, %v1017_v19  ;;  %v1865_v42 = vadd.f32 %v3621_v48, %v1777_v18  ;;  %v4060_v43 = vld [vmem:[#allocation43_spill] sm:$0xff] }
 0x1e4   :  { %v1807_v26 = vadd.f32 %v1545_v29, %v968_v46  ;;  %v1808_v57 = vadd.f32 %v1574_v30, %v997_v8  ;;  %v1794_v46 = vadd.f32 %v1629_v17, %v1052_v7  ;;  %v1943_v8 = vmax.f32 %v1879_v14, 0.0  ;;  %v4062_v7 = vld [vmem:[#allocation44_spill] sm:$0xff]  ;;  %v4072_v18 = vld [vmem:[#allocation35_spill] sm:$0xff] }
 0x1e5   :  { %v1762_v17 = vadd.f32 %v3753_v28, %v1046_v21  ;;  %v1927_v30 = vmax.f32 %v1863_v32, 0.0  ;;  %v1881_v13 = vadd.f32 %v3631_v51, %v1793_v45  ;;  %v1866_v28 = vadd.f32 %v3621_v48, %v1778_v49  ;;  %v4063_v32 = vld [vmem:[#allocation88_spill] sm:$0xff]  ;;  %v4073_v49 = vld [vmem:[#allocation79_spill] sm:$0xff] }
 0x1e6   :  { %v1895_v58 = vadd.f32 %v3619_v62, %v1807_v26  ;;  %v1896_v56 = vadd.f32 %v3619_v62, %v1808_v57  ;;  %v1882_v26 = vadd.f32 %v3631_v51, %v1794_v46  ;;  %v1911_v57 = vmax.f32 %v1847_v15, 0.0  ;;  %v4070_v46 = vld [vmem:[#allocation48_spill] sm:$0xff] }
 0x1e7   :  { %v1849_v47 = vadd.f32 %v3657_v37, %v1761_v22  ;;  %v1850_v35 = vadd.f32 %v3657_v37, %v1762_v17  ;;  %v1945_v21 = vmax.f32 %v1881_v13, 0.0  ;;  %v1929_v63 = vmax.f32 %v1865_v42, 0.0  ;;  %v4071_v15 = vld [vmem:[#allocation92_spill] sm:$0xff] }
 0x1e8   :  { %v1959_v50 = vmax.f32 %v1895_v58, 0.0  ;;  %v1960_v59 = vmax.f32 %v1896_v56, 0.0  ;;  %v1946_v34 = vmax.f32 %v1882_v26, 0.0  ;;  %v1930_v58 = vmax.f32 %v1866_v28, 0.0  ;;  %v4075_v22 = vld [vmem:[#allocation80_spill] sm:$0xff]  ;;  %v4078_v28 = vld [vmem:[#allocation38_spill] sm:$0xff] }
 0x1e9   :  { %v1913_v41 = vmax.f32 %v1849_v47, 0.0  ;;  %v1914_v10 = vmax.f32 %v1850_v35, 0.0  ;;  %v1081_v20 = vadd.f32 %v4061_v27, %v4060_v43  ;;  %v1110_v40 = vadd.f32 %v4063_v32, %v4062_v7  ;;  %v4085_v43 = vld [vmem:[#allocation89_spill] sm:$0xff] }
 0x1ea   :  { %v1603_v0 = vpop.f32.mrf.mxu2  ;;  %v1632_v12 = vpop.f32.mrf.mxu3  ;;  %2150 = vmatpush.msra.mxu0 %v1959_v50  ;;  %2170 = vmatpush.msra.mxu1 %v1960_v59  ;;  %v4064_v50 = vld [vmem:[#allocation39_spill] sm:$0xff]  ;;  %v1113_v44 = vadd.f32 %v4071_v15, %v4070_v46 }
 0x1eb   :  { %v1809_v54 = vadd.f32 %v1603_v0, %v1026_v3  ;;  %v1810_v39 = vadd.f32 %v1632_v12, %v1055_v52  ;;  %v3805_v53 = vpop.f32.mrf.mxu0  ;;  %v3807_v29 = vpop.f32.mrf.mxu1  ;;  %v4065_v59 = vld [vmem:[#allocation83_spill] sm:$0xff]  ;;  %v4067_v3 = vld [vmem:[#allocation84_spill] sm:$0xff] }
 0x1ec   :  { %2151 = vmatpush.msra.mxu0 %v1943_v8  ;;  %2171 = vmatpush.msra.mxu1 %v1944_v9  ;;  %v1078_v60 = vadd.f32 %v4065_v59, %v4064_v50  ;;  %v1107_v4 = vadd.f32 %v4067_v3, %v4066_v31  ;;  %v4069_v52 = vld [vmem:[#allocation91_spill] sm:$0xff]  ;;  %v4088_v59 = vld [vmem:[#allocation49_spill] sm:$0xff]  ;;  %v4090_v3 = vld [vmem:[#allocation50_spill] sm:$0xff] }
 0x1ed   :  { %v1897_v61 = vadd.f32 %v3619_v62, %v1809_v54  ;;  %v1898_v11 = vadd.f32 %v3619_v62, %v1810_v39  ;;  %v1084_v45 = vadd.f32 %v4069_v52, %v4068_v23  ;;  %v1075_v54 = vadd.f32 %v4073_v49, %v4072_v18  ;;  %v4074_v39 = vld [vmem:[#allocation36_spill] sm:$0xff] }
 0x1ee   :  { %2152 = vmatpush.msra.mxu0 %v1927_v30  ;;  %2172 = vmatpush.msra.mxu1 %v1928_v25  ;;  %v1104_v17 = vadd.f32 %v4075_v22, %v4074_v39 }
 0x1ef   :  { %v1961_v16 = vmax.f32 %v1897_v61, 0.0  ;;  %v1962_v19 = vmax.f32 %v1898_v11, 0.0  ;;  %v1763_v47 = vadd.f32 %v3805_v53, %v1075_v54  ;;  %v4086_v53 = vld [vmem:[#allocation46_spill] sm:$0xff] }
 0x1f0   :  { %2153 = vmatpush.msra.mxu0 %v1911_v57  ;;  %2173 = vmatpush.msra.mxu1 %v1912_v33  ;;  %v4076_v57 = vld [vmem:[#allocation37_spill] sm:$0xff]  ;;  %v1764_v35 = vadd.f32 %v3807_v29, %v1104_v17 }
 0x1f1   :  { %2190 = vmatpush.msra.mxu2 %v1961_v16  ;;  %2210 = vmatpush.msra.mxu3 %v1962_v19  ;;  %v4077_v33 = vld [vmem:[#allocation81_spill] sm:$0xff]  ;;  %v4079_v16 = vld [vmem:[#allocation82_spill] sm:$0xff]  ;;  %v1851_v46 = vadd.f32 %v3657_v37, %v1763_v47 }
 0x1f2   :  { %v3819_v24 = vpop.f32.mrf.mxu2  ;;  %v3821_v14 = vpop.f32.mrf.mxu3  ;;  %2647 = vmatmul.msk.f32.vlgmr.msra.gmra.mxu1 %vm1974_vm0, %v3728_v38  ;;  %2646 = vmatmul.msk.f32.vlgmr.msra.gmra.mxu0 %vm1974_vm0, %v3728_v38  ;;  %v1133_v42 = vadd.f32 %v4077_v33, %v4076_v57  ;;  %v1162_v19 = vadd.f32 %v4079_v16, %v4078_v28  ;;  %v1852_v15 = vadd.f32 %v3657_v37, %v1764_v35 }
 0x1f3   :  { %2191 = vmatpush.msra.mxu2 %v1945_v21  ;;  %2211 = vmatpush.msra.mxu3 %v1946_v34  ;;  %v1655_v56 = vpop.f32.mrf.mxu0  ;;  %v1684_v2 = vpop.f32.mrf.mxu1 }
 0x1f4   :  { %v1779_v13 = vadd.f32 %v1655_v56, %v1078_v60  ;;  %v1780_v26 = vadd.f32 %v1684_v2, %v1107_v4  ;;  %v4080_v56 = vld [vmem:[#allocation41_spill] sm:$0xff]  ;;  %v4091_v4 = vld [vmem:[#allocation94_spill] sm:$0xff]  ;;  %v1765_v17 = vadd.f32 %v3819_v24, %v1133_v42 }
 0x1f5   :  { %2192 = vmatpush.msra.mxu2 %v1929_v63  ;;  %2212 = vmatpush.msra.mxu3 %v1930_v58  ;;  %v4081_v2 = vld [vmem:[#allocation85_spill] sm:$0xff]  ;;  %v1171_v23 = vadd.f32 %v4091_v4, %v4090_v3 }
 0x1f6   :  { %v1867_v7 = vadd.f32 %v3621_v48, %v1779_v13  ;;  %v1868_v32 = vadd.f32 %v3621_v48, %v1780_v26  ;;  %v4089_v60 = vld [vmem:[#allocation93_spill] sm:$0xff]  ;;  %v1853_v33 = vadd.f32 %v3657_v37, %v1765_v17 }
 0x1f7   :  { %2193 = vmatpush.msra.mxu2 %v1913_v41  ;;  %2213 = vmatpush.msra.mxu3 %v1914_v10  ;;  %v1136_v41 = vadd.f32 %v4081_v2, %v4080_v56  ;;  %v4082_v10 = vld [vmem:[#allocation42_spill] sm:$0xff]  ;;  %v1142_v31 = vadd.f32 %v4089_v60, %v4088_v59 }
 0x1f8   :  { %2648 = vmatmul.msk.f32.vlgmr.msra.gmra.mxu2 %vm1974_vm0, %v3728_v38  ;;  %2649 = vmatmul.msk.f32.vlgmr.msra.gmra.mxu3 %vm1974_vm0, %v3728_v38  ;;  %v1917_v16 = vmax.f32 %v1853_v33, 0.0 }
 0x1fa   :  { %v1713_v36 = vpop.f32.mrf.mxu2  ;;  %v1742_v5 = vpop.f32.mrf.mxu3 }
 0x1fb   :  { %v1658_v1 = vpop.f32.mrf.mxu0  ;;  %v1687_v6 = vpop.f32.mrf.mxu1  ;;  %v1781_v49 = vadd.f32 %v1713_v36, %v1136_v41  ;;  %v1915_v36 = vmax.f32 %v1851_v46, 0.0 }
 0x1fc   :  { %v1795_v8 = vadd.f32 %v1658_v1, %v1081_v20  ;;  %v1796_v9 = vadd.f32 %v1687_v6, %v1110_v40  ;;  %v1165_v1 = vadd.f32 %v4083_v55, %v4082_v10  ;;  %v4084_v6 = vld [vmem:[#allocation45_spill] sm:$0xff]  ;;  %v4087_v20 = vld [vmem:[#allocation90_spill] sm:$0xff] }
 0x1fd   :  { %v1139_v27 = vadd.f32 %v4085_v43, %v4084_v6  ;;  %v1168_v29 = vadd.f32 %v4087_v20, %v4086_v53  ;;  %v1869_v24 = vadd.f32 %v3621_v48, %v1781_v49 }
 0x1fe   :  { %v1883_v21 = vadd.f32 %v3631_v51, %v1795_v8  ;;  %v1884_v34 = vadd.f32 %v3631_v51, %v1796_v9  ;;  %v1782_v54 = vadd.f32 %v1742_v5, %v1165_v1  ;;  %v1916_v5 = vmax.f32 %v1852_v15, 0.0 }
 0x200   :  { %v1948_v8 = vmax.f32 %v1884_v34, 0.0 }
 0x202   :  { %v1716_v0 = vpop.f32.mrf.mxu2  ;;  %v1745_v12 = vpop.f32.mrf.mxu3 }
 0x203   :  { %v1661_v30 = vpop.f32.mrf.mxu0  ;;  %v1690_v25 = vpop.f32.mrf.mxu1  ;;  %v1797_v52 = vadd.f32 %v1716_v0, %v1139_v27  ;;  %v1931_v0 = vmax.f32 %v1867_v7, 0.0 }
 0x204   :  { %v1811_v61 = vadd.f32 %v1661_v30, %v1084_v45  ;;  %v1812_v11 = vadd.f32 %v1690_v25, %v1113_v44  ;;  %v1798_v45 = vadd.f32 %v1745_v12, %v1168_v29  ;;  %v1947_v44 = vmax.f32 %v1883_v21, 0.0 }
 0x205   :  { %v1766_v30 = vadd.f32 %v3821_v14, %v1162_v19  ;;  %v1932_v12 = vmax.f32 %v1868_v32, 0.0  ;;  %v1885_v25 = vadd.f32 %v3631_v51, %v1797_v52  ;;  %v1870_v14 = vadd.f32 %v3621_v48, %v1782_v54 }
 0x206   :  { %v1899_v63 = vadd.f32 %v3619_v62, %v1811_v61  ;;  %v1900_v58 = vadd.f32 %v3619_v62, %v1812_v11  ;;  %v1886_v13 = vadd.f32 %v3631_v51, %v1798_v45 }
 0x207   :  { %v1854_v51 = vadd.f32 %v3657_v37, %v1766_v30  ;;  %v1949_v42 = vmax.f32 %v1885_v25, 0.0  ;;  %v1934_v48 = vmax.f32 %v1870_v14, 0.0 }
 0x208   :  { %v1963_v40 = vmax.f32 %v1899_v63, 0.0  ;;  %v1964_v50 = vmax.f32 %v1900_v58, 0.0  ;;  %v1950_v28 = vmax.f32 %v1886_v13, 0.0 }
 0x209   :  { %v1918_v19 = vmax.f32 %v1854_v51, 0.0 }
 0x20a   :  { %v1719_v9 = vpop.f32.mrf.mxu2  ;;  %v1748_v18 = vpop.f32.mrf.mxu3  ;;  %2230 = vmatpush.msrb.mxu0 %v1963_v40  ;;  %2250 = vmatpush.msrb.mxu1 %v1964_v50 }
 0x20b   :  { %v1813_v39 = vadd.f32 %v1719_v9, %v1142_v31  ;;  %v1814_v22 = vadd.f32 %v1748_v18, %v1171_v23 }
 0x20c   :  { %2231 = vmatpush.msrb.mxu0 %v1947_v44  ;;  %2251 = vmatpush.msrb.mxu1 %v1948_v8 }
 0x20d   :  { %v1901_v26 = vadd.f32 %v3619_v62, %v1813_v39  ;;  %v1902_v61 = vadd.f32 %v3619_v62, %v1814_v22  ;;  %v1933_v62 = vmax.f32 %v1869_v24, 0.0 }
 0x20e   :  { %2232 = vmatpush.msrb.mxu0 %v1931_v0  ;;  %2252 = vmatpush.msrb.mxu1 %v1932_v12 }
 0x20f   :  { %v1965_v11 = vmax.f32 %v1901_v26, 0.0  ;;  %v1966_v57 = vmax.f32 %v1902_v61, 0.0 }
 0x210   :  { %2233 = vmatpush.msrb.mxu0 %v1915_v36  ;;  %2253 = vmatpush.msrb.mxu1 %v1916_v5 }
 0x211   :  { %2270 = vmatpush.msrb.mxu2 %v1965_v11  ;;  %2290 = vmatpush.msrb.mxu3 %v1966_v57 }
 0x212   :  { %2651 = vmatmul.msk.f32.vlgmr.msrb.gmra.mxu1 %vm1974_vm0, %v3728_v38  ;;  %2650 = vmatmul.msk.f32.vlgmr.msrb.gmra.mxu0 %vm1974_vm0, %v3728_v38 }
 0x213   :  { %2271 = vmatpush.msrb.mxu2 %v1949_v42  ;;  %2291 = vmatpush.msrb.mxu3 %v1950_v28 }
 0x215   :  { %2272 = vmatpush.msrb.mxu2 %v1933_v62  ;;  %2292 = vmatpush.msrb.mxu3 %v1934_v48 }
 0x217   :  { %2273 = vmatpush.msrb.mxu2 %v1917_v16  ;;  %2293 = vmatpush.msrb.mxu3 %v1918_v19 }
 0x218   :  { %2652 = vmatmul.msk.f32.vlgmr.msrb.gmra.mxu2 %vm1974_vm0, %v3728_v38  ;;  %2653 = vmatmul.msk.f32.vlgmr.msrb.gmra.mxu3 %vm1974_vm0, %v3728_v38 }
 0x237   :  { %v1972_v34 = vpop.permute.xlu2 %1971 }
 0x23c   :  { %v2015_v37 = vpop.f32.mrf.mxu1  ;;  %v1995_v47 = vpop.f32.mrf.mxu0 }
 0x23d   :  { %v1996_v63 = vadd.f32 %v1995_v47, %v1972_v34  ;;  %v2016_v58 = vadd.f32 %v2015_v37, %v1972_v34 }
 0x23f   :  { %v2314_v10 = vrot.slane %v2016_v58, 6 }
 0x241   :  { %v2327_v43 = vsel %vm2326_vm5, %v1996_v63, %v2314_v10 }
 0x243   :  { %v2035_v35 = vpop.f32.mrf.mxu2  ;;  %v2055_v21 = vpop.f32.mrf.mxu3 }
 0x244   :  { %v2036_v56 = vadd.f32 %v2035_v35, %v1972_v34  ;;  %v2056_v2 = vadd.f32 %v2055_v21, %v1972_v34 }
 0x246   :  { %v2315_v55 = vrot.slane %v2036_v56, 4  ;;  %v2316_v1 = vrot.slane %v2056_v2, 2 }
 0x248   :  { %v2329_v38 = vsel %vm2328_vm6, %v2315_v55, %v2316_v1 }
 0x249   :  { %v2331_v27 = vsel %vm2330_vm7, %v2327_v43, %v2329_v38 }
 0x24a   :  { %2345 = vst [vmem:[#allocation5] sm:$0xff] %v2331_v27 }
 0x24f   :  { %v2095_v41 = vpop.f32.mrf.mxu1  ;;  %v2075_v53 = vpop.f32.mrf.mxu0 }
 0x250   :  { %v2096_v6 = vadd.f32 %v2095_v41, %v1972_v34  ;;  %v2076_v29 = vadd.f32 %v2075_v53, %v1972_v34 }
 0x252   :  { %v2317_v20 = vrot.slane %v2096_v6, 6 }
 0x254   :  { %v2332_v31 = vsel %vm2326_vm5, %v2076_v29, %v2317_v20 }
 0x25b   :  { %v2115_v7 = vpop.f32.mrf.mxu2  ;;  %v2135_v32 = vpop.f32.mrf.mxu3 }
 0x25c   :  { %v2116_v40 = vadd.f32 %v2115_v7, %v1972_v34  ;;  %v2136_v50 = vadd.f32 %v2135_v32, %v1972_v34 }
 0x25e   :  { %v2318_v59 = vrot.slane %v2116_v40, 4  ;;  %v2319_v60 = vrot.slane %v2136_v50, 2 }
 0x260   :  { %v2333_v3 = vsel %vm2328_vm6, %v2318_v59, %v2319_v60 }
 0x261   :  { %v2334_v4 = vsel %vm2330_vm7, %v2332_v31, %v2333_v3 }
 0x262   :  { %2346 = vst [vmem:[#allocation5 + $0x8] sm:$0xff] %v2334_v4 }
 0x26f   :  { %v2175_v23 = vpop.f32.mrf.mxu1  ;;  %v2155_v45 = vpop.f32.mrf.mxu0 }
 0x270   :  { %v2176_v52 = vadd.f32 %v2175_v23, %v1972_v34  ;;  %v2156_v15 = vadd.f32 %v2155_v45, %v1972_v34 }
 0x272   :  { %v2320_v46 = vrot.slane %v2176_v52, 6 }
 0x274   :  { %v2335_v39 = vsel %vm2326_vm5, %v2156_v15, %v2320_v46 }
 0x27b   :  { %v2195_v44 = vpop.f32.mrf.mxu2  ;;  %v2215_v8 = vpop.f32.mrf.mxu3 }
 0x27c   :  { %v2196_v9 = vadd.f32 %v2195_v44, %v1972_v34  ;;  %v2216_v18 = vadd.f32 %v2215_v8, %v1972_v34 }
 0x27e   :  { %v2321_v49 = vrot.slane %v2196_v9, 4  ;;  %v2322_v54 = vrot.slane %v2216_v18, 2 }
 0x280   :  { %v2336_v22 = vsel %vm2328_vm6, %v2321_v49, %v2322_v54 }
 0x281   :  { %v2337_v17 = vsel %vm2330_vm7, %v2335_v39, %v2336_v22 }
 0x282   :  { %2347 = vst [vmem:[#allocation5 + $0x10] sm:$0xff] %v2337_v17 }
 0x28f   :  { %v2255_v30 = vpop.f32.mrf.mxu1  ;;  %v2235_v12 = vpop.f32.mrf.mxu0 }
 0x290   :  { %v2256_v0 = vadd.f32 %v2255_v30, %v1972_v34  ;;  %v2236_v5 = vadd.f32 %v2235_v12, %v1972_v34 }
 0x292   :  { %v2323_v26 = vrot.slane %v2256_v0, 6 }
 0x294   :  { %v2338_v57 = vsel %vm2326_vm5, %v2236_v5, %v2323_v26 }
 0x29b   :  { %v2275_v25 = vpop.f32.mrf.mxu2  ;;  %v2295_v13 = vpop.f32.mrf.mxu3 }
 0x29c   :  { %v2276_v61 = vadd.f32 %v2275_v25, %v1972_v34  ;;  %v2296_v36 = vadd.f32 %v2295_v13, %v1972_v34 }
 0x29e   :  { %v2324_v24 = vrot.slane %v2276_v61, 4  ;;  %v2325_v14 = vrot.slane %v2296_v36, 2 }
 0x2a0   :  { %v2339_v11 = vsel %vm2328_vm6, %v2324_v24, %v2325_v14 }
 0x2a1   :  { %v2340_v33 = vsel %vm2330_vm7, %v2338_v57, %v2339_v11 }
 0x2a2   :  { %2348 = vst [vmem:[#allocation5 + $0x18] sm:$0xff] %v2340_v33 }
 0x2a3   :  { %2359 = dma.vmem_to_hbm [thread:$0]  %s2355_s25, 512, %s2357_s27, [#allocation4]  }
 0x2a4   :  { %2713 = dma.done.wait [#allocation4], 512  }
 0x2a5   :  { %2714 = vsyncadd [#allocation4], 4294966784 }
 0x2a6   :  { %2364 = vsyncpa [#allocation3], 1 }
 0x2a7   :  { %2365 = vsyncpa [#allocation4], 1 }

</bundles_post_ra>
